<compile_context>
chip_gen: v5e
topology: v5e:2x2
jax: 0.10.0
libtpu: 0.0.40
codegen_flags: <defaults>
</compile_context>

<pallas_src>
import jax
import jax.numpy as jnp
from jax.experimental import pallas as pl
from jax.experimental.pallas import tpu as pltpu


def _bcast_mul_kernel(x_ref, s_ref, o_ref):
    # x_ref: (TC, HW), s_ref: (TC, 1) -> broadcast over the lane (spatial) axis.
    # jnp promotion performs the multiply in the wider dtype; cast only at store.
    o_ref[...] = (x_ref[...] * s_ref[...]).astype(o_ref.dtype)


def _num_row_blocks():
    """1 block on single-TensorCore chips (v5e/v6e); 2 on v7x (2 TCs/chip)."""
    try:
        kind = jax.devices()[0].device_kind.lower()
    except Exception:
        return 1
    if ("v7" in kind) or ("7x" in kind):
        return 2
    return 1


def _vmem_cap_bytes():
    """Conservative scoped-VMEM cap, derived from hardware when queryable."""
    cap = 32 << 20  # safe on v5e/v6e (128 MiB phys) and v7x (64 MiB phys / TC)
    try:
        cap = min(cap, int(pltpu.get_tpu_info().vmem_capacity_bytes) // 2)
    except Exception:
        pass
    return max(cap, 16 << 20)


def broadcast_mul(x, scale, *, num_blocks=None):
    """x: (N, C, H, W), scale: (N, C, 1, 1). Returns x * scale (PyTorch promotion)."""
    N, C, H, W = x.shape
    assert scale.shape == (N, C, 1, 1)
    rows = N * C
    hw = H * W

    out_dtype = jnp.promote_types(x.dtype, scale.dtype)

    x2 = x.reshape(rows, hw)
    s2 = scale.reshape(rows, 1)  # native dtype; promoted inside the kernel

    x_item = jnp.dtype(x.dtype).itemsize
    s_item = jnp.dtype(scale.dtype).itemsize
    o_item = jnp.dtype(out_dtype).itemsize
    # Sublane multiple for the narrowest participating dtype: 8 (f32), 16 (bf16), 32 (i8).
    sub = max(8, 32 // min(x_item, o_item))

    if num_blocks is None:
        num_blocks = _num_row_blocks()

    # --- honest per-row VMEM cost (double-buffered x + out tiles, lanes padded
    # to 128, plus the lane-padded (tc, 1) scale column) ----------------------
    hw_pad = pl.cdiv(hw, 128) * 128
    bytes_per_row = 2 * (hw_pad * x_item + hw_pad * o_item + 128 * s_item)
    vmem_cap = _vmem_cap_bytes()
    budget = vmem_cap - (4 << 20)  # headroom for compiler-internal scratch

    # --- tile-size selection -------------------------------------------------
    if rows <= sub * num_blocks:
        # Tiny: one block covering everything (block == full array dims).
        tc = rows
    else:
        # Split into `num_blocks` roughly-equal row tiles (megacore on v7x),
        # rounded up to the sublane multiple; ragged tail is a masked edge block.
        tc = pl.cdiv(pl.cdiv(rows, num_blocks), sub) * sub
        max_tc = max(sub, (budget // bytes_per_row) // sub * sub)
        tc = min(tc, max_tc)

    grid = pl.cdiv(rows, tc)

    need = tc * bytes_per_row
    vmem_limit = int(min(max(need + (2 << 20), 16 << 20), vmem_cap))

    out2 = pl.pallas_call(
        _bcast_mul_kernel,
        out_shape=jax.ShapeDtypeStruct((rows, hw), out_dtype),
        grid=(grid,),
        in_specs=[
            pl.BlockSpec((tc, hw), lambda i: (i, 0)),
            pl.BlockSpec((tc, 1), lambda i: (i, 0)),
        ],
        out_specs=pl.BlockSpec((tc, hw), lambda i: (i, 0)),
        compiler_params=pltpu.CompilerParams(
            dimension_semantics=("parallel",),
            vmem_limit_bytes=vmem_limit,
        ),
    )(x2, s2)

    return out2.reshape(N, C, H, W)


if __name__ == "__main__":
    # Module's real shape: (1, 2304, 7, 7) * (1, 2304, 1, 1) -- small (~450 KB).
    N, C, H, W = 1, 2304, 7, 7
    key = jax.random.PRNGKey(0)
    k1, k2 = jax.random.split(key)
    x700 = jax.random.normal(k1, (N, C, H, W), dtype=jnp.float32)
    x705 = jax.random.normal(k2, (N, C, 1, 1), dtype=jnp.float32)

    out = broadcast_mul(x700, x705)
    out = jax.block_until_ready(out)

    ref = x700 * x705
    assert out.shape == (N, C, H, W)
    assert out.dtype == x700.dtype
    assert jnp.allclose(out, ref, atol=1e-6, rtol=1e-6)

    # Also exercise a ragged / non-power-of-two channel count path.
    xs = jax.random.normal(k1, (2, 24, 5, 5), dtype=jnp.float32)
    ss = jax.random.normal(k2, (2, 24, 1, 1), dtype=jnp.float32)
    outs = jax.block_until_ready(broadcast_mul(xs, ss))
    assert jnp.allclose(outs, xs * ss, atol=1e-6, rtol=1e-6)

    # Mixed-dtype path (bf16 x, f32 scale): promoted f32 compute and output.
    xb = xs.astype(jnp.bfloat16)
    outb = jax.block_until_ready(broadcast_mul(xb, ss))
    assert outb.dtype == jnp.float32
    assert jnp.allclose(outb, xb.astype(jnp.float32) * ss, atol=1e-2, rtol=1e-2)

    print("KERNEL_OK")
</pallas_src>

<mosaic_0001>
module attributes {stable_mosaic.version = 11 : i64} {
  func.func @_bcast_mul_kernel(%arg0: i32, %arg1: memref<2304x49xf32, #tpu.memory_space<vmem>>, %arg2: memref<2304x1xf32, #tpu.memory_space<vmem>>, %arg3: memref<2304x49xf32, #tpu.memory_space<vmem>>) attributes {dimension_semantics = [#tpu.dimension_semantics<parallel>], iteration_bounds = array<i64: 1>, scalar_prefetch = 0 : i64, scratch_operands = 0 : i64, tpu.core_type = #tpu.core_type<tc>, window_params = [{transform_indices = @transform_0, window_bounds = array<i64: 2304, 49>}, {transform_indices = @transform_1, window_bounds = array<i64: 2304, 1>}, {transform_indices = @transform_2, window_bounds = array<i64: 2304, 49>}]} {
    %c0 = arith.constant 0 : index
    %c0_0 = arith.constant 0 : index
    %0 = vector.load %arg1[%c0, %c0_0] : memref<2304x49xf32, #tpu.memory_space<vmem>>, vector<2304x49xf32>
    %c0_1 = arith.constant 0 : index
    %c0_2 = arith.constant 0 : index
    %1 = vector.load %arg2[%c0_1, %c0_2] : memref<2304x1xf32, #tpu.memory_space<vmem>>, vector<2304x1xf32>
    %2 = vector.broadcast %1 : vector<2304x1xf32> to vector<2304x49xf32>
    %3 = arith.mulf %0, %2 : vector<2304x49xf32>
    %c0_3 = arith.constant 0 : index
    %c0_4 = arith.constant 0 : index
    %4 = vector.load %arg3[%c0_3, %c0_4] : memref<2304x49xf32, #tpu.memory_space<vmem>>, vector<2304x49xf32>
    tpu.vector_store %arg3[%c0_3, %c0_4], %3 {strides = array<i32>} : memref<2304x49xf32, #tpu.memory_space<vmem>>, vector<2304x49xf32>,
    return
  }
  func.func @transform_0(%arg0: i32) -> (i32, i32) {
    %c0_i32 = arith.constant 0 : i32
    %c0_i32_0 = arith.constant 0 : i32
    return %arg0, %c0_i32 : i32, i32
  }
  func.func @transform_1(%arg0: i32) -> (i32, i32) {
    %c0_i32 = arith.constant 0 : i32
    %c0_i32_0 = arith.constant 0 : i32
    return %arg0, %c0_i32 : i32, i32
  }
  func.func @transform_2(%arg0: i32) -> (i32, i32) {
    %c0_i32 = arith.constant 0 : i32
    %c0_i32_0 = arith.constant 0 : i32
    return %arg0, %c0_i32 : i32, i32
  }
}

</mosaic_0001>

<bundles_post_ra>
// kernel: tpu_custom_call.1
= control target key start
LH: loop header
LB: loop body
LE: loop exit
PB: predicated region body
PF: predicated region fallthrough
CT: control target
= control target key end

     0   :  { %v2612_v0 = vmov 0   ;;  %vm2315_vm0 = vcmask 400384   ;;  %s5508_s1 = inlined_call_operand.vmem [shape: f32[2304,1], index: 1, kind: input, shape index: {}]   ;;  %s5509_s0 = inlined_call_operand.vmem [shape: f32[2304,49], index: 0, kind: input, shape index: {}]   ;;  %s5510_s2 = inlined_call_operand.vmem [shape: f32[2304,49], index: 2, kind: output, shape index: {}]  }
   0x1   :  { %2611 = vset.pattern.permute.xlu2 %v2612_v0  ;;  %2610 = vset.pattern.permute.xlu1 %v2612_v0  ;;  %v303_v1 = vld [vmem:[%s5508_s1 + $0x20] sm:$0xff]  ;;  %v301_v2 = vld [vmem:[%s5508_s1 + $0x10] sm:$0xff]  ;;  %v304_v4 = vld [vmem:[%s5508_s1 + $0x28] sm:$0xff] }
   0x2   :  { %v299_v3 = vld [vmem:[%s5508_s1] sm:$0xff]  ;;  %2609 = vset.pattern.permute.xlu0 %v2612_v0  ;;  %609 = vperm.xlu2 %2611, %v303_v1   ;;  %v302_v5 = vld [vmem:[%s5508_s1 + $0x18] sm:$0xff]  ;;  %v300_v6 = vld [vmem:[%s5508_s1 + $0x8] sm:$0xff] }
   0x3   :  { %599 = vperm.xlu1 %2610, %v301_v2   ;;  %589 = vperm.xlu0 %2609, %v299_v3   ;;  %v307_v7 = vld [vmem:[%s5508_s1 + $0x40] sm:$0xff]  ;;  %v306_v8 = vld [vmem:[%s5508_s1 + $0x38] sm:$0xff]  ;;  %v305_v9 = vld [vmem:[%s5508_s1 + $0x30] sm:$0xff] }
   0x4   :  { %v310_v10 = vld [vmem:[%s5508_s1 + $0x58] sm:$0xff]  ;;  %v309_v11 = vld [vmem:[%s5508_s1 + $0x50] sm:$0xff]  ;;  %v308_v12 = vld [vmem:[%s5508_s1 + $0x48] sm:$0xff] }
   0x5   :  { %v313_v13 = vld [vmem:[%s5508_s1 + $0x70] sm:$0xff]  ;;  %v312_v14 = vld [vmem:[%s5508_s1 + $0x68] sm:$0xff]  ;;  %v311_v15 = vld [vmem:[%s5508_s1 + $0x60] sm:$0xff] }
   0x6   :  { %v316_v16 = vld [vmem:[%s5508_s1 + $0x88] sm:$0xff]  ;;  %v315_v17 = vld [vmem:[%s5508_s1 + $0x80] sm:$0xff]  ;;  %v314_v18 = vld [vmem:[%s5508_s1 + $0x78] sm:$0xff] }
   0x7   :  { %v319_v19 = vld [vmem:[%s5508_s1 + $0xa0] sm:$0xff]  ;;  %v318_v20 = vld [vmem:[%s5508_s1 + $0x98] sm:$0xff]  ;;  %v317_v21 = vld [vmem:[%s5508_s1 + $0x90] sm:$0xff] }
   0x8   :  { %v322_v22 = vld [vmem:[%s5508_s1 + $0xb8] sm:$0xff]  ;;  %v321_v23 = vld [vmem:[%s5508_s1 + $0xb0] sm:$0xff]  ;;  %v320_v24 = vld [vmem:[%s5508_s1 + $0xa8] sm:$0xff] }
   0x9   :  { %v325_v25 = vld [vmem:[%s5508_s1 + $0xd0] sm:$0xff]  ;;  %v324_v26 = vld [vmem:[%s5508_s1 + $0xc8] sm:$0xff]  ;;  %v323_v27 = vld [vmem:[%s5508_s1 + $0xc0] sm:$0xff] }
   0xa   :  { %614 = vperm.xlu2 %2611, %v304_v4   ;;  %v328_v28 = vld [vmem:[%s5508_s1 + $0xe8] sm:$0xff]  ;;  %v327_v29 = vld [vmem:[%s5508_s1 + $0xe0] sm:$0xff]  ;;  %v326_v30 = vld [vmem:[%s5508_s1 + $0xd8] sm:$0xff] }
   0xb   :  { %604 = vperm.xlu1 %2610, %v302_v5   ;;  %594 = vperm.xlu0 %2609, %v300_v6   ;;  %v331_v31 = vld [vmem:[%s5508_s1 + $0x100] sm:$0xff]  ;;  %v330_v32 = vld [vmem:[%s5508_s1 + $0xf8] sm:$0xff]  ;;  %v329_v33 = vld [vmem:[%s5508_s1 + $0xf0] sm:$0xff] }
   0xc   :  { %v334_v34 = vld [vmem:[%s5508_s1 + $0x118] sm:$0xff]  ;;  %v333_v35 = vld [vmem:[%s5508_s1 + $0x110] sm:$0xff]  ;;  %v332_v36 = vld [vmem:[%s5508_s1 + $0x108] sm:$0xff] }
   0xd   :  { %v15_v37 = vld [vmem:[%s5509_s0 + $0x20] sm:$0xff]  ;;  %v337_v40 = vld [vmem:[%s5508_s1 + $0x130] sm:$0xff]  ;;  %v336_v41 = vld [vmem:[%s5508_s1 + $0x128] sm:$0xff] }
   0xe   :  { %v335_v42 = vld [vmem:[%s5508_s1 + $0x120] sm:$0xff]  ;;  %v16_v43 = vld [vmem:[%s5509_s0 + $0x28] sm:$0xff]  ;;  %v338_v48 = vld [vmem:[%s5508_s1 + $0x138] sm:$0xff] }
   0xf   :  { %v340_v46 = vld [vmem:[%s5508_s1 + $0x148] sm:$0xff]  ;;  %v339_v47 = vld [vmem:[%s5508_s1 + $0x140] sm:$0xff]  ;;  %v342_v53 = vld [vmem:[%s5508_s1 + $0x158] sm:$0xff] }
  0x10   :  { %v19_v49 = vld [vmem:[%s5509_s0 + $0x40] sm:$0xff]  ;;  %v341_v54 = vld [vmem:[%s5508_s1 + $0x150] sm:$0xff]  ;;  %v22_v55 = vld [vmem:[%s5509_s0 + $0x58] sm:$0xff] }
  0x11   :  { %v343_v52 = vld [vmem:[%s5508_s1 + $0x160] sm:$0xff]  ;;  %v13_v56 = vld [vmem:[%s5509_s0 + $0x10] sm:$0xff]  ;;  %v346_v0 = vld [vmem:[%s5508_s1 + $0x178] sm:$0xff] }
  0x12   :  { %629 = vperm.xlu2 %2611, %v307_v7   ;;  %v11_v57 = vld [vmem:[%s5509_s0] sm:$0xff]  ;;  %v345_v1 = vld [vmem:[%s5508_s1 + $0x170] sm:$0xff]  ;;  %v344_v2 = vld [vmem:[%s5508_s1 + $0x168] sm:$0xff] }
  0x13   :  { %624 = vperm.xlu1 %2610, %v306_v8   ;;  %619 = vperm.xlu0 %2609, %v305_v9   ;;  %v25_v3 = vld [vmem:[%s5509_s0 + $0x70] sm:$0xff]  ;;  %v14_v4 = vld [vmem:[%s5509_s0 + $0x18] sm:$0xff]  ;;  %v12_v5 = vld [vmem:[%s5509_s0 + $0x8] sm:$0xff] }
  0x1a   :  { %644 = vperm.xlu2 %2611, %v310_v10  }
  0x1b   :  { %639 = vperm.xlu1 %2610, %v309_v11   ;;  %634 = vperm.xlu0 %2609, %v308_v12   ;;  %v349_v12 = vld [vmem:[%s5508_s1 + $0x190] sm:$0xff] }
  0x22   :  { %659 = vperm.xlu2 %2611, %v313_v13   ;;  %v348_v13 = vld [vmem:[%s5508_s1 + $0x188] sm:$0xff] }
  0x23   :  { %654 = vperm.xlu1 %2610, %v312_v14   ;;  %649 = vperm.xlu0 %2609, %v311_v15   ;;  %v347_v14 = vld [vmem:[%s5508_s1 + $0x180] sm:$0xff]  ;;  %v28_v15 = vld [vmem:[%s5509_s0 + $0x88] sm:$0xff] }
  0x2a   :  { %674 = vperm.xlu2 %2611, %v316_v16   ;;  %v18_v16 = vld [vmem:[%s5509_s0 + $0x38] sm:$0xff] }
  0x2b   :  { %669 = vperm.xlu1 %2610, %v315_v17   ;;  %664 = vperm.xlu0 %2609, %v314_v18   ;;  %v17_v17 = vld [vmem:[%s5509_s0 + $0x30] sm:$0xff] }
  0x32   :  { %689 = vperm.xlu2 %2611, %v319_v19  }
  0x33   :  { %684 = vperm.xlu1 %2610, %v318_v20   ;;  %679 = vperm.xlu0 %2609, %v317_v21  }
  0x3a   :  { %704 = vperm.xlu2 %2611, %v322_v22  }
  0x3b   :  { %699 = vperm.xlu1 %2610, %v321_v23   ;;  %694 = vperm.xlu0 %2609, %v320_v24   ;;  %v352_v24 = vld [vmem:[%s5508_s1 + $0x1a8] sm:$0xff] }
  0x42   :  { %719 = vperm.xlu2 %2611, %v325_v25   ;;  %v351_v25 = vld [vmem:[%s5508_s1 + $0x1a0] sm:$0xff] }
  0x43   :  { %714 = vperm.xlu1 %2610, %v324_v26   ;;  %709 = vperm.xlu0 %2609, %v323_v27   ;;  %v350_v26 = vld [vmem:[%s5508_s1 + $0x198] sm:$0xff]  ;;  %v31_v27 = vld [vmem:[%s5509_s0 + $0xa0] sm:$0xff] }
  0x4a   :  { %734 = vperm.xlu2 %2611, %v328_v28   ;;  %v21_v28 = vld [vmem:[%s5509_s0 + $0x50] sm:$0xff] }
  0x4b   :  { %729 = vperm.xlu1 %2610, %v327_v29   ;;  %724 = vperm.xlu0 %2609, %v326_v30   ;;  %v20_v29 = vld [vmem:[%s5509_s0 + $0x48] sm:$0xff] }
  0x52   :  { %749 = vperm.xlu2 %2611, %v331_v31  }
  0x53   :  { %744 = vperm.xlu1 %2610, %v330_v32   ;;  %739 = vperm.xlu0 %2609, %v329_v33  }
  0x5a   :  { %764 = vperm.xlu2 %2611, %v334_v34  }
  0x5b   :  { %759 = vperm.xlu1 %2610, %v333_v35   ;;  %754 = vperm.xlu0 %2609, %v332_v36   ;;  %v355_v36 = vld [vmem:[%s5508_s1 + $0x1c0] sm:$0xff] }
  0x5c   :  { %v610_v38 = vpop.permute.xlu2 %609 }
  0x5d   :  { %v2031_v39 = vmul.f32 %v610_v38, %v15_v37  ;;  %v354_v37 = vld [vmem:[%s5508_s1 + $0x1b8] sm:$0xff]  ;;  %v353_v38 = vld [vmem:[%s5508_s1 + $0x1b0] sm:$0xff] }
  0x5f   :  { %2320 = vst.msk [vmem:[%s5510_s2 + $0x20] sm:$0xff] %vm2315_vm0, %v2031_v39  ;;  %v34_v39 = vld [vmem:[%s5509_s0 + $0xb8] sm:$0xff] }
  0x62   :  { %779 = vperm.xlu2 %2611, %v337_v40   ;;  %v24_v40 = vld [vmem:[%s5509_s0 + $0x68] sm:$0xff] }
  0x63   :  { %774 = vperm.xlu1 %2610, %v336_v41   ;;  %769 = vperm.xlu0 %2609, %v335_v42   ;;  %v23_v41 = vld [vmem:[%s5509_s0 + $0x60] sm:$0xff] }
  0x64   :  { %v615_v44 = vpop.permute.xlu2 %614 }
  0x65   :  { %v2032_v45 = vmul.f32 %v615_v44, %v16_v43 }
  0x67   :  { %2321 = vst.msk [vmem:[%s5510_s2 + $0x28] sm:$0xff] %vm2315_vm0, %v2032_v45 }
  0x6a   :  { %794 = vperm.xlu2 %2611, %v340_v46  }
  0x6b   :  { %789 = vperm.xlu1 %2610, %v339_v47   ;;  %784 = vperm.xlu0 %2609, %v338_v48   ;;  %v358_v48 = vld [vmem:[%s5508_s1 + $0x1d8] sm:$0xff] }
  0x6c   :  { %v630_v50 = vpop.permute.xlu2 %629 }
  0x6d   :  { %v2035_v51 = vmul.f32 %v630_v50, %v19_v49  ;;  %v357_v49 = vld [vmem:[%s5508_s1 + $0x1d0] sm:$0xff]  ;;  %v356_v50 = vld [vmem:[%s5508_s1 + $0x1c8] sm:$0xff] }
  0x6f   :  { %2324 = vst.msk [vmem:[%s5510_s2 + $0x40] sm:$0xff] %vm2315_vm0, %v2035_v51  ;;  %v37_v51 = vld [vmem:[%s5509_s0 + $0xd0] sm:$0xff] }
  0x72   :  { %809 = vperm.xlu2 %2611, %v343_v52   ;;  %v27_v52 = vld [vmem:[%s5509_s0 + $0x80] sm:$0xff] }
  0x73   :  { %804 = vperm.xlu1 %2610, %v342_v53   ;;  %799 = vperm.xlu0 %2609, %v341_v54   ;;  %v26_v53 = vld [vmem:[%s5509_s0 + $0x78] sm:$0xff] }
  0x74   :  { %v645_v58 = vpop.permute.xlu2 %644 }
  0x75   :  { %v2038_v59 = vmul.f32 %v645_v58, %v22_v55  ;;  %v600_v60 = vpop.permute.xlu1 %599  ;;  %v590_v61 = vpop.permute.xlu0 %589 }
  0x76   :  { %v2029_v62 = vmul.f32 %v600_v60, %v13_v56  ;;  %v2027_v63 = vmul.f32 %v590_v61, %v11_v57  ;;  %v361_v60 = vld [vmem:[%s5508_s1 + $0x1f0] sm:$0xff]  ;;  %v360_v61 = vld [vmem:[%s5508_s1 + $0x1e8] sm:$0xff] }
  0x77   :  { %2327 = vst.msk [vmem:[%s5510_s2 + $0x58] sm:$0xff] %vm2315_vm0, %v2038_v59 }
  0x78   :  { %2318 = vst.msk [vmem:[%s5510_s2 + $0x10] sm:$0xff] %vm2315_vm0, %v2029_v62  ;;  %v359_v62 = vld [vmem:[%s5508_s1 + $0x1e0] sm:$0xff] }
  0x79   :  { %2316 = vst.msk [vmem:[%s5510_s2] sm:$0xff] %vm2315_vm0, %v2027_v63  ;;  %v40_v63 = vld [vmem:[%s5509_s0 + $0xe8] sm:$0xff] }
  0x7a   :  { %824 = vperm.xlu2 %2611, %v346_v0   ;;  %v30_v0 = vld [vmem:[%s5509_s0 + $0x98] sm:$0xff] }
  0x7b   :  { %819 = vperm.xlu1 %2610, %v345_v1   ;;  %814 = vperm.xlu0 %2609, %v344_v2   ;;  %v29_v1 = vld [vmem:[%s5509_s0 + $0x90] sm:$0xff] }
  0x7c   :  { %v660_v6 = vpop.permute.xlu2 %659 }
  0x7d   :  { %v2041_v7 = vmul.f32 %v660_v6, %v25_v3  ;;  %v605_v8 = vpop.permute.xlu1 %604  ;;  %v595_v9 = vpop.permute.xlu0 %594 }
  0x7e   :  { %v2030_v10 = vmul.f32 %v605_v8, %v14_v4  ;;  %v2028_v11 = vmul.f32 %v595_v9, %v12_v5  ;;  %v364_v8 = vld [vmem:[%s5508_s1 + $0x208] sm:$0xff]  ;;  %v363_v9 = vld [vmem:[%s5508_s1 + $0x200] sm:$0xff] }
  0x7f   :  { %2330 = vst.msk [vmem:[%s5510_s2 + $0x70] sm:$0xff] %vm2315_vm0, %v2041_v7 }
  0x80   :  { %2319 = vst.msk [vmem:[%s5510_s2 + $0x18] sm:$0xff] %vm2315_vm0, %v2030_v10  ;;  %v362_v10 = vld [vmem:[%s5508_s1 + $0x1f8] sm:$0xff] }
  0x81   :  { %2317 = vst.msk [vmem:[%s5510_s2 + $0x8] sm:$0xff] %vm2315_vm0, %v2028_v11  ;;  %v43_v11 = vld [vmem:[%s5509_s0 + $0x100] sm:$0xff] }
  0x82   :  { %839 = vperm.xlu2 %2611, %v349_v12   ;;  %v33_v12 = vld [vmem:[%s5509_s0 + $0xb0] sm:$0xff] }
  0x83   :  { %834 = vperm.xlu1 %2610, %v348_v13   ;;  %829 = vperm.xlu0 %2609, %v347_v14   ;;  %v32_v13 = vld [vmem:[%s5509_s0 + $0xa8] sm:$0xff] }
  0x84   :  { %v675_v18 = vpop.permute.xlu2 %674 }
  0x85   :  { %v2044_v19 = vmul.f32 %v675_v18, %v28_v15  ;;  %v625_v20 = vpop.permute.xlu1 %624  ;;  %v620_v21 = vpop.permute.xlu0 %619 }
  0x86   :  { %v2034_v22 = vmul.f32 %v625_v20, %v18_v16  ;;  %v2033_v23 = vmul.f32 %v620_v21, %v17_v17  ;;  %v367_v20 = vld [vmem:[%s5508_s1 + $0x220] sm:$0xff]  ;;  %v366_v21 = vld [vmem:[%s5508_s1 + $0x218] sm:$0xff] }
  0x87   :  { %2333 = vst.msk [vmem:[%s5510_s2 + $0x88] sm:$0xff] %vm2315_vm0, %v2044_v19 }
  0x88   :  { %2323 = vst.msk [vmem:[%s5510_s2 + $0x38] sm:$0xff] %vm2315_vm0, %v2034_v22  ;;  %v365_v22 = vld [vmem:[%s5508_s1 + $0x210] sm:$0xff] }
  0x89   :  { %2322 = vst.msk [vmem:[%s5510_s2 + $0x30] sm:$0xff] %vm2315_vm0, %v2033_v23  ;;  %v46_v23 = vld [vmem:[%s5509_s0 + $0x118] sm:$0xff] }
  0x8a   :  { %854 = vperm.xlu2 %2611, %v352_v24   ;;  %v36_v24 = vld [vmem:[%s5509_s0 + $0xc8] sm:$0xff] }
  0x8b   :  { %849 = vperm.xlu1 %2610, %v351_v25   ;;  %844 = vperm.xlu0 %2609, %v350_v26   ;;  %v35_v25 = vld [vmem:[%s5509_s0 + $0xc0] sm:$0xff] }
  0x8c   :  { %v690_v30 = vpop.permute.xlu2 %689 }
  0x8d   :  { %v2047_v31 = vmul.f32 %v690_v30, %v31_v27  ;;  %v640_v32 = vpop.permute.xlu1 %639  ;;  %v635_v33 = vpop.permute.xlu0 %634 }
  0x8e   :  { %v2037_v34 = vmul.f32 %v640_v32, %v21_v28  ;;  %v2036_v35 = vmul.f32 %v635_v33, %v20_v29  ;;  %v370_v32 = vld [vmem:[%s5508_s1 + $0x238] sm:$0xff]  ;;  %v369_v33 = vld [vmem:[%s5508_s1 + $0x230] sm:$0xff] }
  0x8f   :  { %2336 = vst.msk [vmem:[%s5510_s2 + $0xa0] sm:$0xff] %vm2315_vm0, %v2047_v31 }
  0x90   :  { %2326 = vst.msk [vmem:[%s5510_s2 + $0x50] sm:$0xff] %vm2315_vm0, %v2037_v34  ;;  %v368_v34 = vld [vmem:[%s5508_s1 + $0x228] sm:$0xff] }
  0x91   :  { %2325 = vst.msk [vmem:[%s5510_s2 + $0x48] sm:$0xff] %vm2315_vm0, %v2036_v35  ;;  %v49_v35 = vld [vmem:[%s5509_s0 + $0x130] sm:$0xff] }
  0x92   :  { %869 = vperm.xlu2 %2611, %v355_v36   ;;  %v39_v36 = vld [vmem:[%s5509_s0 + $0xe0] sm:$0xff] }
  0x93   :  { %864 = vperm.xlu1 %2610, %v354_v37   ;;  %859 = vperm.xlu0 %2609, %v353_v38   ;;  %v38_v37 = vld [vmem:[%s5509_s0 + $0xd8] sm:$0xff] }
  0x94   :  { %v705_v42 = vpop.permute.xlu2 %704 }
  0x95   :  { %v2050_v43 = vmul.f32 %v705_v42, %v34_v39  ;;  %v655_v44 = vpop.permute.xlu1 %654  ;;  %v650_v45 = vpop.permute.xlu0 %649 }
  0x96   :  { %v2040_v46 = vmul.f32 %v655_v44, %v24_v40  ;;  %v2039_v47 = vmul.f32 %v650_v45, %v23_v41  ;;  %v373_v44 = vld [vmem:[%s5508_s1 + $0x250] sm:$0xff]  ;;  %v372_v45 = vld [vmem:[%s5508_s1 + $0x248] sm:$0xff] }
  0x97   :  { %2339 = vst.msk [vmem:[%s5510_s2 + $0xb8] sm:$0xff] %vm2315_vm0, %v2050_v43 }
  0x98   :  { %2329 = vst.msk [vmem:[%s5510_s2 + $0x68] sm:$0xff] %vm2315_vm0, %v2040_v46  ;;  %v371_v46 = vld [vmem:[%s5508_s1 + $0x240] sm:$0xff] }
  0x99   :  { %2328 = vst.msk [vmem:[%s5510_s2 + $0x60] sm:$0xff] %vm2315_vm0, %v2039_v47  ;;  %v52_v47 = vld [vmem:[%s5509_s0 + $0x148] sm:$0xff] }
  0x9a   :  { %884 = vperm.xlu2 %2611, %v358_v48   ;;  %v42_v48 = vld [vmem:[%s5509_s0 + $0xf8] sm:$0xff] }
  0x9b   :  { %879 = vperm.xlu1 %2610, %v357_v49   ;;  %874 = vperm.xlu0 %2609, %v356_v50   ;;  %v41_v49 = vld [vmem:[%s5509_s0 + $0xf0] sm:$0xff] }
  0x9c   :  { %v720_v54 = vpop.permute.xlu2 %719 }
  0x9d   :  { %v2053_v55 = vmul.f32 %v720_v54, %v37_v51  ;;  %v670_v56 = vpop.permute.xlu1 %669  ;;  %v665_v57 = vpop.permute.xlu0 %664 }
  0x9e   :  { %v2043_v58 = vmul.f32 %v670_v56, %v27_v52  ;;  %v2042_v59 = vmul.f32 %v665_v57, %v26_v53  ;;  %v376_v56 = vld [vmem:[%s5508_s1 + $0x268] sm:$0xff]  ;;  %v375_v57 = vld [vmem:[%s5508_s1 + $0x260] sm:$0xff] }
  0x9f   :  { %2342 = vst.msk [vmem:[%s5510_s2 + $0xd0] sm:$0xff] %vm2315_vm0, %v2053_v55 }
  0xa0   :  { %2332 = vst.msk [vmem:[%s5510_s2 + $0x80] sm:$0xff] %vm2315_vm0, %v2043_v58  ;;  %v374_v58 = vld [vmem:[%s5508_s1 + $0x258] sm:$0xff] }
  0xa1   :  { %2331 = vst.msk [vmem:[%s5510_s2 + $0x78] sm:$0xff] %vm2315_vm0, %v2042_v59  ;;  %v55_v59 = vld [vmem:[%s5509_s0 + $0x160] sm:$0xff] }
  0xa2   :  { %899 = vperm.xlu2 %2611, %v361_v60   ;;  %v45_v60 = vld [vmem:[%s5509_s0 + $0x110] sm:$0xff] }
  0xa3   :  { %894 = vperm.xlu1 %2610, %v360_v61   ;;  %889 = vperm.xlu0 %2609, %v359_v62   ;;  %v44_v61 = vld [vmem:[%s5509_s0 + $0x108] sm:$0xff] }
  0xa4   :  { %v735_v2 = vpop.permute.xlu2 %734 }
  0xa5   :  { %v2056_v3 = vmul.f32 %v735_v2, %v40_v63  ;;  %v685_v4 = vpop.permute.xlu1 %684  ;;  %v680_v5 = vpop.permute.xlu0 %679 }
  0xa6   :  { %v2046_v6 = vmul.f32 %v685_v4, %v30_v0  ;;  %v2045_v7 = vmul.f32 %v680_v5, %v29_v1  ;;  %v379_v4 = vld [vmem:[%s5508_s1 + $0x280] sm:$0xff]  ;;  %v378_v5 = vld [vmem:[%s5508_s1 + $0x278] sm:$0xff] }
  0xa7   :  { %2345 = vst.msk [vmem:[%s5510_s2 + $0xe8] sm:$0xff] %vm2315_vm0, %v2056_v3 }
  0xa8   :  { %2335 = vst.msk [vmem:[%s5510_s2 + $0x98] sm:$0xff] %vm2315_vm0, %v2046_v6  ;;  %v377_v6 = vld [vmem:[%s5508_s1 + $0x270] sm:$0xff] }
  0xa9   :  { %2334 = vst.msk [vmem:[%s5510_s2 + $0x90] sm:$0xff] %vm2315_vm0, %v2045_v7  ;;  %v58_v7 = vld [vmem:[%s5509_s0 + $0x178] sm:$0xff] }
  0xaa   :  { %914 = vperm.xlu2 %2611, %v364_v8   ;;  %v48_v8 = vld [vmem:[%s5509_s0 + $0x128] sm:$0xff] }
  0xab   :  { %909 = vperm.xlu1 %2610, %v363_v9   ;;  %904 = vperm.xlu0 %2609, %v362_v10   ;;  %v47_v9 = vld [vmem:[%s5509_s0 + $0x120] sm:$0xff] }
  0xac   :  { %v750_v14 = vpop.permute.xlu2 %749 }
  0xad   :  { %v2059_v15 = vmul.f32 %v750_v14, %v43_v11  ;;  %v700_v16 = vpop.permute.xlu1 %699  ;;  %v695_v17 = vpop.permute.xlu0 %694 }
  0xae   :  { %v2049_v18 = vmul.f32 %v700_v16, %v33_v12  ;;  %v2048_v19 = vmul.f32 %v695_v17, %v32_v13  ;;  %v382_v16 = vld [vmem:[%s5508_s1 + $0x298] sm:$0xff]  ;;  %v381_v17 = vld [vmem:[%s5508_s1 + $0x290] sm:$0xff] }
  0xaf   :  { %2348 = vst.msk [vmem:[%s5510_s2 + $0x100] sm:$0xff] %vm2315_vm0, %v2059_v15 }
  0xb0   :  { %2338 = vst.msk [vmem:[%s5510_s2 + $0xb0] sm:$0xff] %vm2315_vm0, %v2049_v18  ;;  %v380_v18 = vld [vmem:[%s5508_s1 + $0x288] sm:$0xff] }
  0xb1   :  { %2337 = vst.msk [vmem:[%s5510_s2 + $0xa8] sm:$0xff] %vm2315_vm0, %v2048_v19  ;;  %v61_v19 = vld [vmem:[%s5509_s0 + $0x190] sm:$0xff] }
  0xb2   :  { %929 = vperm.xlu2 %2611, %v367_v20   ;;  %v51_v20 = vld [vmem:[%s5509_s0 + $0x140] sm:$0xff] }
  0xb3   :  { %924 = vperm.xlu1 %2610, %v366_v21   ;;  %919 = vperm.xlu0 %2609, %v365_v22   ;;  %v50_v21 = vld [vmem:[%s5509_s0 + $0x138] sm:$0xff] }
  0xb4   :  { %v765_v26 = vpop.permute.xlu2 %764 }
  0xb5   :  { %v2062_v27 = vmul.f32 %v765_v26, %v46_v23  ;;  %v715_v28 = vpop.permute.xlu1 %714  ;;  %v710_v29 = vpop.permute.xlu0 %709 }
  0xb6   :  { %v2052_v30 = vmul.f32 %v715_v28, %v36_v24  ;;  %v2051_v31 = vmul.f32 %v710_v29, %v35_v25  ;;  %v385_v28 = vld [vmem:[%s5508_s1 + $0x2b0] sm:$0xff]  ;;  %v384_v29 = vld [vmem:[%s5508_s1 + $0x2a8] sm:$0xff] }
  0xb7   :  { %2351 = vst.msk [vmem:[%s5510_s2 + $0x118] sm:$0xff] %vm2315_vm0, %v2062_v27 }
  0xb8   :  { %2341 = vst.msk [vmem:[%s5510_s2 + $0xc8] sm:$0xff] %vm2315_vm0, %v2052_v30  ;;  %v383_v30 = vld [vmem:[%s5508_s1 + $0x2a0] sm:$0xff] }
  0xb9   :  { %2340 = vst.msk [vmem:[%s5510_s2 + $0xc0] sm:$0xff] %vm2315_vm0, %v2051_v31  ;;  %v64_v31 = vld [vmem:[%s5509_s0 + $0x1a8] sm:$0xff] }
  0xba   :  { %944 = vperm.xlu2 %2611, %v370_v32   ;;  %v54_v32 = vld [vmem:[%s5509_s0 + $0x158] sm:$0xff] }
  0xbb   :  { %939 = vperm.xlu1 %2610, %v369_v33   ;;  %934 = vperm.xlu0 %2609, %v368_v34   ;;  %v53_v33 = vld [vmem:[%s5509_s0 + $0x150] sm:$0xff] }
  0xbc   :  { %v780_v38 = vpop.permute.xlu2 %779 }
  0xbd   :  { %v2065_v39 = vmul.f32 %v780_v38, %v49_v35  ;;  %v730_v40 = vpop.permute.xlu1 %729  ;;  %v725_v41 = vpop.permute.xlu0 %724 }
  0xbe   :  { %v2055_v42 = vmul.f32 %v730_v40, %v39_v36  ;;  %v2054_v43 = vmul.f32 %v725_v41, %v38_v37  ;;  %v388_v40 = vld [vmem:[%s5508_s1 + $0x2c8] sm:$0xff]  ;;  %v387_v41 = vld [vmem:[%s5508_s1 + $0x2c0] sm:$0xff] }
  0xbf   :  { %2354 = vst.msk [vmem:[%s5510_s2 + $0x130] sm:$0xff] %vm2315_vm0, %v2065_v39 }
  0xc0   :  { %2344 = vst.msk [vmem:[%s5510_s2 + $0xe0] sm:$0xff] %vm2315_vm0, %v2055_v42  ;;  %v386_v42 = vld [vmem:[%s5508_s1 + $0x2b8] sm:$0xff] }
  0xc1   :  { %2343 = vst.msk [vmem:[%s5510_s2 + $0xd8] sm:$0xff] %vm2315_vm0, %v2054_v43  ;;  %v67_v43 = vld [vmem:[%s5509_s0 + $0x1c0] sm:$0xff] }
  0xc2   :  { %959 = vperm.xlu2 %2611, %v373_v44   ;;  %v57_v44 = vld [vmem:[%s5509_s0 + $0x170] sm:$0xff] }
  0xc3   :  { %954 = vperm.xlu1 %2610, %v372_v45   ;;  %949 = vperm.xlu0 %2609, %v371_v46   ;;  %v56_v45 = vld [vmem:[%s5509_s0 + $0x168] sm:$0xff] }
  0xc4   :  { %v795_v50 = vpop.permute.xlu2 %794 }
  0xc5   :  { %v2068_v51 = vmul.f32 %v795_v50, %v52_v47  ;;  %v745_v52 = vpop.permute.xlu1 %744  ;;  %v740_v53 = vpop.permute.xlu0 %739 }
  0xc6   :  { %v2058_v54 = vmul.f32 %v745_v52, %v42_v48  ;;  %v2057_v55 = vmul.f32 %v740_v53, %v41_v49  ;;  %v391_v52 = vld [vmem:[%s5508_s1 + $0x2e0] sm:$0xff]  ;;  %v390_v53 = vld [vmem:[%s5508_s1 + $0x2d8] sm:$0xff] }
  0xc7   :  { %2357 = vst.msk [vmem:[%s5510_s2 + $0x148] sm:$0xff] %vm2315_vm0, %v2068_v51 }
  0xc8   :  { %2347 = vst.msk [vmem:[%s5510_s2 + $0xf8] sm:$0xff] %vm2315_vm0, %v2058_v54  ;;  %v389_v54 = vld [vmem:[%s5508_s1 + $0x2d0] sm:$0xff] }
  0xc9   :  { %2346 = vst.msk [vmem:[%s5510_s2 + $0xf0] sm:$0xff] %vm2315_vm0, %v2057_v55  ;;  %v70_v55 = vld [vmem:[%s5509_s0 + $0x1d8] sm:$0xff] }
  0xca   :  { %974 = vperm.xlu2 %2611, %v376_v56   ;;  %v60_v56 = vld [vmem:[%s5509_s0 + $0x188] sm:$0xff] }
  0xcb   :  { %969 = vperm.xlu1 %2610, %v375_v57   ;;  %964 = vperm.xlu0 %2609, %v374_v58   ;;  %v59_v57 = vld [vmem:[%s5509_s0 + $0x180] sm:$0xff] }
  0xcc   :  { %v810_v62 = vpop.permute.xlu2 %809 }
  0xcd   :  { %v2071_v63 = vmul.f32 %v810_v62, %v55_v59  ;;  %v760_v0 = vpop.permute.xlu1 %759  ;;  %v755_v1 = vpop.permute.xlu0 %754 }
  0xce   :  { %v2061_v2 = vmul.f32 %v760_v0, %v45_v60  ;;  %v2060_v3 = vmul.f32 %v755_v1, %v44_v61  ;;  %v394_v0 = vld [vmem:[%s5508_s1 + $0x2f8] sm:$0xff]  ;;  %v393_v1 = vld [vmem:[%s5508_s1 + $0x2f0] sm:$0xff] }
  0xcf   :  { %2360 = vst.msk [vmem:[%s5510_s2 + $0x160] sm:$0xff] %vm2315_vm0, %v2071_v63 }
  0xd0   :  { %2350 = vst.msk [vmem:[%s5510_s2 + $0x110] sm:$0xff] %vm2315_vm0, %v2061_v2  ;;  %v392_v2 = vld [vmem:[%s5508_s1 + $0x2e8] sm:$0xff] }
  0xd1   :  { %2349 = vst.msk [vmem:[%s5510_s2 + $0x108] sm:$0xff] %vm2315_vm0, %v2060_v3  ;;  %v73_v3 = vld [vmem:[%s5509_s0 + $0x1f0] sm:$0xff] }
  0xd2   :  { %989 = vperm.xlu2 %2611, %v379_v4   ;;  %v63_v4 = vld [vmem:[%s5509_s0 + $0x1a0] sm:$0xff] }
  0xd3   :  { %984 = vperm.xlu1 %2610, %v378_v5   ;;  %979 = vperm.xlu0 %2609, %v377_v6   ;;  %v62_v5 = vld [vmem:[%s5509_s0 + $0x198] sm:$0xff] }
  0xd4   :  { %v825_v10 = vpop.permute.xlu2 %824 }
  0xd5   :  { %v2074_v11 = vmul.f32 %v825_v10, %v58_v7  ;;  %v775_v12 = vpop.permute.xlu1 %774  ;;  %v770_v13 = vpop.permute.xlu0 %769 }
  0xd6   :  { %v2064_v14 = vmul.f32 %v775_v12, %v48_v8  ;;  %v2063_v15 = vmul.f32 %v770_v13, %v47_v9  ;;  %v397_v12 = vld [vmem:[%s5508_s1 + $0x310] sm:$0xff]  ;;  %v396_v13 = vld [vmem:[%s5508_s1 + $0x308] sm:$0xff] }
  0xd7   :  { %2363 = vst.msk [vmem:[%s5510_s2 + $0x178] sm:$0xff] %vm2315_vm0, %v2074_v11 }
  0xd8   :  { %2353 = vst.msk [vmem:[%s5510_s2 + $0x128] sm:$0xff] %vm2315_vm0, %v2064_v14  ;;  %v395_v14 = vld [vmem:[%s5508_s1 + $0x300] sm:$0xff] }
  0xd9   :  { %2352 = vst.msk [vmem:[%s5510_s2 + $0x120] sm:$0xff] %vm2315_vm0, %v2063_v15  ;;  %v76_v15 = vld [vmem:[%s5509_s0 + $0x208] sm:$0xff] }
  0xda   :  { %1004 = vperm.xlu2 %2611, %v382_v16   ;;  %v66_v16 = vld [vmem:[%s5509_s0 + $0x1b8] sm:$0xff] }
  0xdb   :  { %999 = vperm.xlu1 %2610, %v381_v17   ;;  %994 = vperm.xlu0 %2609, %v380_v18   ;;  %v65_v17 = vld [vmem:[%s5509_s0 + $0x1b0] sm:$0xff] }
  0xdc   :  { %v840_v22 = vpop.permute.xlu2 %839 }
  0xdd   :  { %v2077_v23 = vmul.f32 %v840_v22, %v61_v19  ;;  %v790_v24 = vpop.permute.xlu1 %789  ;;  %v785_v25 = vpop.permute.xlu0 %784 }
  0xde   :  { %v2067_v26 = vmul.f32 %v790_v24, %v51_v20  ;;  %v2066_v27 = vmul.f32 %v785_v25, %v50_v21  ;;  %v400_v24 = vld [vmem:[%s5508_s1 + $0x328] sm:$0xff]  ;;  %v399_v25 = vld [vmem:[%s5508_s1 + $0x320] sm:$0xff] }
  0xdf   :  { %2366 = vst.msk [vmem:[%s5510_s2 + $0x190] sm:$0xff] %vm2315_vm0, %v2077_v23 }
  0xe0   :  { %2356 = vst.msk [vmem:[%s5510_s2 + $0x140] sm:$0xff] %vm2315_vm0, %v2067_v26  ;;  %v398_v26 = vld [vmem:[%s5508_s1 + $0x318] sm:$0xff] }
  0xe1   :  { %2355 = vst.msk [vmem:[%s5510_s2 + $0x138] sm:$0xff] %vm2315_vm0, %v2066_v27  ;;  %v79_v27 = vld [vmem:[%s5509_s0 + $0x220] sm:$0xff] }
  0xe2   :  { %1019 = vperm.xlu2 %2611, %v385_v28   ;;  %v69_v28 = vld [vmem:[%s5509_s0 + $0x1d0] sm:$0xff] }
  0xe3   :  { %1014 = vperm.xlu1 %2610, %v384_v29   ;;  %1009 = vperm.xlu0 %2609, %v383_v30   ;;  %v68_v29 = vld [vmem:[%s5509_s0 + $0x1c8] sm:$0xff] }
  0xe4   :  { %v855_v34 = vpop.permute.xlu2 %854 }
  0xe5   :  { %v2080_v35 = vmul.f32 %v855_v34, %v64_v31  ;;  %v805_v36 = vpop.permute.xlu1 %804  ;;  %v800_v37 = vpop.permute.xlu0 %799 }
  0xe6   :  { %v2070_v38 = vmul.f32 %v805_v36, %v54_v32  ;;  %v2069_v39 = vmul.f32 %v800_v37, %v53_v33  ;;  %v403_v36 = vld [vmem:[%s5508_s1 + $0x340] sm:$0xff]  ;;  %v402_v37 = vld [vmem:[%s5508_s1 + $0x338] sm:$0xff] }
  0xe7   :  { %2369 = vst.msk [vmem:[%s5510_s2 + $0x1a8] sm:$0xff] %vm2315_vm0, %v2080_v35 }
  0xe8   :  { %2359 = vst.msk [vmem:[%s5510_s2 + $0x158] sm:$0xff] %vm2315_vm0, %v2070_v38  ;;  %v401_v38 = vld [vmem:[%s5508_s1 + $0x330] sm:$0xff] }
  0xe9   :  { %2358 = vst.msk [vmem:[%s5510_s2 + $0x150] sm:$0xff] %vm2315_vm0, %v2069_v39  ;;  %v82_v39 = vld [vmem:[%s5509_s0 + $0x238] sm:$0xff] }
  0xea   :  { %1034 = vperm.xlu2 %2611, %v388_v40   ;;  %v72_v40 = vld [vmem:[%s5509_s0 + $0x1e8] sm:$0xff] }
  0xeb   :  { %1029 = vperm.xlu1 %2610, %v387_v41   ;;  %1024 = vperm.xlu0 %2609, %v386_v42   ;;  %v71_v41 = vld [vmem:[%s5509_s0 + $0x1e0] sm:$0xff] }
  0xec   :  { %v870_v46 = vpop.permute.xlu2 %869 }
  0xed   :  { %v2083_v47 = vmul.f32 %v870_v46, %v67_v43  ;;  %v820_v48 = vpop.permute.xlu1 %819  ;;  %v815_v49 = vpop.permute.xlu0 %814 }
  0xee   :  { %v2073_v50 = vmul.f32 %v820_v48, %v57_v44  ;;  %v2072_v51 = vmul.f32 %v815_v49, %v56_v45  ;;  %v406_v48 = vld [vmem:[%s5508_s1 + $0x358] sm:$0xff]  ;;  %v405_v49 = vld [vmem:[%s5508_s1 + $0x350] sm:$0xff] }
  0xef   :  { %2372 = vst.msk [vmem:[%s5510_s2 + $0x1c0] sm:$0xff] %vm2315_vm0, %v2083_v47 }
  0xf0   :  { %2362 = vst.msk [vmem:[%s5510_s2 + $0x170] sm:$0xff] %vm2315_vm0, %v2073_v50  ;;  %v404_v50 = vld [vmem:[%s5508_s1 + $0x348] sm:$0xff] }
  0xf1   :  { %2361 = vst.msk [vmem:[%s5510_s2 + $0x168] sm:$0xff] %vm2315_vm0, %v2072_v51  ;;  %v85_v51 = vld [vmem:[%s5509_s0 + $0x250] sm:$0xff] }
  0xf2   :  { %1049 = vperm.xlu2 %2611, %v391_v52   ;;  %v75_v52 = vld [vmem:[%s5509_s0 + $0x200] sm:$0xff] }
  0xf3   :  { %1044 = vperm.xlu1 %2610, %v390_v53   ;;  %1039 = vperm.xlu0 %2609, %v389_v54   ;;  %v74_v53 = vld [vmem:[%s5509_s0 + $0x1f8] sm:$0xff] }
  0xf4   :  { %v885_v58 = vpop.permute.xlu2 %884 }
  0xf5   :  { %v2086_v59 = vmul.f32 %v885_v58, %v70_v55  ;;  %v835_v60 = vpop.permute.xlu1 %834  ;;  %v830_v61 = vpop.permute.xlu0 %829 }
  0xf6   :  { %v2076_v62 = vmul.f32 %v835_v60, %v60_v56  ;;  %v2075_v63 = vmul.f32 %v830_v61, %v59_v57  ;;  %v409_v60 = vld [vmem:[%s5508_s1 + $0x370] sm:$0xff]  ;;  %v408_v61 = vld [vmem:[%s5508_s1 + $0x368] sm:$0xff] }
  0xf7   :  { %2375 = vst.msk [vmem:[%s5510_s2 + $0x1d8] sm:$0xff] %vm2315_vm0, %v2086_v59 }
  0xf8   :  { %2365 = vst.msk [vmem:[%s5510_s2 + $0x188] sm:$0xff] %vm2315_vm0, %v2076_v62  ;;  %v407_v62 = vld [vmem:[%s5508_s1 + $0x360] sm:$0xff] }
  0xf9   :  { %2364 = vst.msk [vmem:[%s5510_s2 + $0x180] sm:$0xff] %vm2315_vm0, %v2075_v63  ;;  %v88_v63 = vld [vmem:[%s5509_s0 + $0x268] sm:$0xff] }
  0xfa   :  { %1064 = vperm.xlu2 %2611, %v394_v0   ;;  %v78_v0 = vld [vmem:[%s5509_s0 + $0x218] sm:$0xff] }
  0xfb   :  { %1059 = vperm.xlu1 %2610, %v393_v1   ;;  %1054 = vperm.xlu0 %2609, %v392_v2   ;;  %v77_v1 = vld [vmem:[%s5509_s0 + $0x210] sm:$0xff] }
  0xfc   :  { %v900_v6 = vpop.permute.xlu2 %899 }
  0xfd   :  { %v2089_v7 = vmul.f32 %v900_v6, %v73_v3  ;;  %v850_v8 = vpop.permute.xlu1 %849  ;;  %v845_v9 = vpop.permute.xlu0 %844 }
  0xfe   :  { %v2079_v10 = vmul.f32 %v850_v8, %v63_v4  ;;  %v2078_v11 = vmul.f32 %v845_v9, %v62_v5  ;;  %v412_v8 = vld [vmem:[%s5508_s1 + $0x388] sm:$0xff]  ;;  %v411_v9 = vld [vmem:[%s5508_s1 + $0x380] sm:$0xff] }
  0xff   :  { %2378 = vst.msk [vmem:[%s5510_s2 + $0x1f0] sm:$0xff] %vm2315_vm0, %v2089_v7 }
 0x100   :  { %2368 = vst.msk [vmem:[%s5510_s2 + $0x1a0] sm:$0xff] %vm2315_vm0, %v2079_v10  ;;  %v410_v10 = vld [vmem:[%s5508_s1 + $0x378] sm:$0xff] }
 0x101   :  { %2367 = vst.msk [vmem:[%s5510_s2 + $0x198] sm:$0xff] %vm2315_vm0, %v2078_v11  ;;  %v91_v11 = vld [vmem:[%s5509_s0 + $0x280] sm:$0xff] }
 0x102   :  { %1079 = vperm.xlu2 %2611, %v397_v12   ;;  %v81_v12 = vld [vmem:[%s5509_s0 + $0x230] sm:$0xff] }
 0x103   :  { %1074 = vperm.xlu1 %2610, %v396_v13   ;;  %1069 = vperm.xlu0 %2609, %v395_v14   ;;  %v80_v13 = vld [vmem:[%s5509_s0 + $0x228] sm:$0xff] }
 0x104   :  { %v915_v18 = vpop.permute.xlu2 %914 }
 0x105   :  { %v2092_v19 = vmul.f32 %v915_v18, %v76_v15  ;;  %v865_v20 = vpop.permute.xlu1 %864  ;;  %v860_v21 = vpop.permute.xlu0 %859 }
 0x106   :  { %v2082_v22 = vmul.f32 %v865_v20, %v66_v16  ;;  %v2081_v23 = vmul.f32 %v860_v21, %v65_v17  ;;  %v415_v20 = vld [vmem:[%s5508_s1 + $0x3a0] sm:$0xff]  ;;  %v414_v21 = vld [vmem:[%s5508_s1 + $0x398] sm:$0xff] }
 0x107   :  { %2381 = vst.msk [vmem:[%s5510_s2 + $0x208] sm:$0xff] %vm2315_vm0, %v2092_v19 }
 0x108   :  { %2371 = vst.msk [vmem:[%s5510_s2 + $0x1b8] sm:$0xff] %vm2315_vm0, %v2082_v22  ;;  %v413_v22 = vld [vmem:[%s5508_s1 + $0x390] sm:$0xff] }
 0x109   :  { %2370 = vst.msk [vmem:[%s5510_s2 + $0x1b0] sm:$0xff] %vm2315_vm0, %v2081_v23  ;;  %v94_v23 = vld [vmem:[%s5509_s0 + $0x298] sm:$0xff] }
 0x10a   :  { %1094 = vperm.xlu2 %2611, %v400_v24   ;;  %v84_v24 = vld [vmem:[%s5509_s0 + $0x248] sm:$0xff] }
 0x10b   :  { %1089 = vperm.xlu1 %2610, %v399_v25   ;;  %1084 = vperm.xlu0 %2609, %v398_v26   ;;  %v83_v25 = vld [vmem:[%s5509_s0 + $0x240] sm:$0xff] }
 0x10c   :  { %v930_v30 = vpop.permute.xlu2 %929 }
 0x10d   :  { %v2095_v31 = vmul.f32 %v930_v30, %v79_v27  ;;  %v880_v32 = vpop.permute.xlu1 %879  ;;  %v875_v33 = vpop.permute.xlu0 %874 }
 0x10e   :  { %v2085_v34 = vmul.f32 %v880_v32, %v69_v28  ;;  %v2084_v35 = vmul.f32 %v875_v33, %v68_v29  ;;  %v418_v32 = vld [vmem:[%s5508_s1 + $0x3b8] sm:$0xff]  ;;  %v417_v33 = vld [vmem:[%s5508_s1 + $0x3b0] sm:$0xff] }
 0x10f   :  { %2384 = vst.msk [vmem:[%s5510_s2 + $0x220] sm:$0xff] %vm2315_vm0, %v2095_v31 }
 0x110   :  { %2374 = vst.msk [vmem:[%s5510_s2 + $0x1d0] sm:$0xff] %vm2315_vm0, %v2085_v34  ;;  %v416_v34 = vld [vmem:[%s5508_s1 + $0x3a8] sm:$0xff] }
 0x111   :  { %2373 = vst.msk [vmem:[%s5510_s2 + $0x1c8] sm:$0xff] %vm2315_vm0, %v2084_v35  ;;  %v97_v35 = vld [vmem:[%s5509_s0 + $0x2b0] sm:$0xff] }
 0x112   :  { %1109 = vperm.xlu2 %2611, %v403_v36   ;;  %v87_v36 = vld [vmem:[%s5509_s0 + $0x260] sm:$0xff] }
 0x113   :  { %1104 = vperm.xlu1 %2610, %v402_v37   ;;  %1099 = vperm.xlu0 %2609, %v401_v38   ;;  %v86_v37 = vld [vmem:[%s5509_s0 + $0x258] sm:$0xff] }
 0x114   :  { %v945_v42 = vpop.permute.xlu2 %944 }
 0x115   :  { %v2098_v43 = vmul.f32 %v945_v42, %v82_v39  ;;  %v895_v44 = vpop.permute.xlu1 %894  ;;  %v890_v45 = vpop.permute.xlu0 %889 }
 0x116   :  { %v2088_v46 = vmul.f32 %v895_v44, %v72_v40  ;;  %v2087_v47 = vmul.f32 %v890_v45, %v71_v41  ;;  %v421_v44 = vld [vmem:[%s5508_s1 + $0x3d0] sm:$0xff]  ;;  %v420_v45 = vld [vmem:[%s5508_s1 + $0x3c8] sm:$0xff] }
 0x117   :  { %2387 = vst.msk [vmem:[%s5510_s2 + $0x238] sm:$0xff] %vm2315_vm0, %v2098_v43 }
 0x118   :  { %2377 = vst.msk [vmem:[%s5510_s2 + $0x1e8] sm:$0xff] %vm2315_vm0, %v2088_v46  ;;  %v419_v46 = vld [vmem:[%s5508_s1 + $0x3c0] sm:$0xff] }
 0x119   :  { %2376 = vst.msk [vmem:[%s5510_s2 + $0x1e0] sm:$0xff] %vm2315_vm0, %v2087_v47  ;;  %v100_v47 = vld [vmem:[%s5509_s0 + $0x2c8] sm:$0xff] }
 0x11a   :  { %1124 = vperm.xlu2 %2611, %v406_v48   ;;  %v90_v48 = vld [vmem:[%s5509_s0 + $0x278] sm:$0xff] }
 0x11b   :  { %1119 = vperm.xlu1 %2610, %v405_v49   ;;  %1114 = vperm.xlu0 %2609, %v404_v50   ;;  %v89_v49 = vld [vmem:[%s5509_s0 + $0x270] sm:$0xff] }
 0x11c   :  { %v960_v54 = vpop.permute.xlu2 %959 }
 0x11d   :  { %v2101_v55 = vmul.f32 %v960_v54, %v85_v51  ;;  %v910_v56 = vpop.permute.xlu1 %909  ;;  %v905_v57 = vpop.permute.xlu0 %904 }
 0x11e   :  { %v2091_v58 = vmul.f32 %v910_v56, %v75_v52  ;;  %v2090_v59 = vmul.f32 %v905_v57, %v74_v53  ;;  %v424_v56 = vld [vmem:[%s5508_s1 + $0x3e8] sm:$0xff]  ;;  %v423_v57 = vld [vmem:[%s5508_s1 + $0x3e0] sm:$0xff] }
 0x11f   :  { %2390 = vst.msk [vmem:[%s5510_s2 + $0x250] sm:$0xff] %vm2315_vm0, %v2101_v55 }
 0x120   :  { %2380 = vst.msk [vmem:[%s5510_s2 + $0x200] sm:$0xff] %vm2315_vm0, %v2091_v58  ;;  %v422_v58 = vld [vmem:[%s5508_s1 + $0x3d8] sm:$0xff] }
 0x121   :  { %2379 = vst.msk [vmem:[%s5510_s2 + $0x1f8] sm:$0xff] %vm2315_vm0, %v2090_v59  ;;  %v103_v59 = vld [vmem:[%s5509_s0 + $0x2e0] sm:$0xff] }
 0x122   :  { %1139 = vperm.xlu2 %2611, %v409_v60   ;;  %v93_v60 = vld [vmem:[%s5509_s0 + $0x290] sm:$0xff] }
 0x123   :  { %1134 = vperm.xlu1 %2610, %v408_v61   ;;  %1129 = vperm.xlu0 %2609, %v407_v62   ;;  %v92_v61 = vld [vmem:[%s5509_s0 + $0x288] sm:$0xff] }
 0x124   :  { %v975_v2 = vpop.permute.xlu2 %974 }
 0x125   :  { %v2104_v3 = vmul.f32 %v975_v2, %v88_v63  ;;  %v925_v4 = vpop.permute.xlu1 %924  ;;  %v920_v5 = vpop.permute.xlu0 %919 }
 0x126   :  { %v2094_v6 = vmul.f32 %v925_v4, %v78_v0  ;;  %v2093_v7 = vmul.f32 %v920_v5, %v77_v1  ;;  %v427_v4 = vld [vmem:[%s5508_s1 + $0x400] sm:$0xff]  ;;  %v426_v5 = vld [vmem:[%s5508_s1 + $0x3f8] sm:$0xff] }
 0x127   :  { %2393 = vst.msk [vmem:[%s5510_s2 + $0x268] sm:$0xff] %vm2315_vm0, %v2104_v3 }
 0x128   :  { %2383 = vst.msk [vmem:[%s5510_s2 + $0x218] sm:$0xff] %vm2315_vm0, %v2094_v6  ;;  %v425_v6 = vld [vmem:[%s5508_s1 + $0x3f0] sm:$0xff] }
 0x129   :  { %2382 = vst.msk [vmem:[%s5510_s2 + $0x210] sm:$0xff] %vm2315_vm0, %v2093_v7  ;;  %v106_v7 = vld [vmem:[%s5509_s0 + $0x2f8] sm:$0xff] }
 0x12a   :  { %1154 = vperm.xlu2 %2611, %v412_v8   ;;  %v96_v8 = vld [vmem:[%s5509_s0 + $0x2a8] sm:$0xff] }
 0x12b   :  { %1149 = vperm.xlu1 %2610, %v411_v9   ;;  %1144 = vperm.xlu0 %2609, %v410_v10   ;;  %v95_v9 = vld [vmem:[%s5509_s0 + $0x2a0] sm:$0xff] }
 0x12c   :  { %v990_v14 = vpop.permute.xlu2 %989 }
 0x12d   :  { %v2107_v15 = vmul.f32 %v990_v14, %v91_v11  ;;  %v940_v16 = vpop.permute.xlu1 %939  ;;  %v935_v17 = vpop.permute.xlu0 %934 }
 0x12e   :  { %v2097_v18 = vmul.f32 %v940_v16, %v81_v12  ;;  %v2096_v19 = vmul.f32 %v935_v17, %v80_v13  ;;  %v430_v16 = vld [vmem:[%s5508_s1 + $0x418] sm:$0xff]  ;;  %v429_v17 = vld [vmem:[%s5508_s1 + $0x410] sm:$0xff] }
 0x12f   :  { %2396 = vst.msk [vmem:[%s5510_s2 + $0x280] sm:$0xff] %vm2315_vm0, %v2107_v15 }
 0x130   :  { %2386 = vst.msk [vmem:[%s5510_s2 + $0x230] sm:$0xff] %vm2315_vm0, %v2097_v18  ;;  %v428_v18 = vld [vmem:[%s5508_s1 + $0x408] sm:$0xff] }
 0x131   :  { %2385 = vst.msk [vmem:[%s5510_s2 + $0x228] sm:$0xff] %vm2315_vm0, %v2096_v19  ;;  %v109_v19 = vld [vmem:[%s5509_s0 + $0x310] sm:$0xff] }
 0x132   :  { %1169 = vperm.xlu2 %2611, %v415_v20   ;;  %v99_v20 = vld [vmem:[%s5509_s0 + $0x2c0] sm:$0xff] }
 0x133   :  { %1164 = vperm.xlu1 %2610, %v414_v21   ;;  %1159 = vperm.xlu0 %2609, %v413_v22   ;;  %v98_v21 = vld [vmem:[%s5509_s0 + $0x2b8] sm:$0xff] }
 0x134   :  { %v1005_v26 = vpop.permute.xlu2 %1004 }
 0x135   :  { %v2110_v27 = vmul.f32 %v1005_v26, %v94_v23  ;;  %v955_v28 = vpop.permute.xlu1 %954  ;;  %v950_v29 = vpop.permute.xlu0 %949 }
 0x136   :  { %v2100_v30 = vmul.f32 %v955_v28, %v84_v24  ;;  %v2099_v31 = vmul.f32 %v950_v29, %v83_v25  ;;  %v433_v28 = vld [vmem:[%s5508_s1 + $0x430] sm:$0xff]  ;;  %v432_v29 = vld [vmem:[%s5508_s1 + $0x428] sm:$0xff] }
 0x137   :  { %2399 = vst.msk [vmem:[%s5510_s2 + $0x298] sm:$0xff] %vm2315_vm0, %v2110_v27 }
 0x138   :  { %2389 = vst.msk [vmem:[%s5510_s2 + $0x248] sm:$0xff] %vm2315_vm0, %v2100_v30  ;;  %v431_v30 = vld [vmem:[%s5508_s1 + $0x420] sm:$0xff] }
 0x139   :  { %2388 = vst.msk [vmem:[%s5510_s2 + $0x240] sm:$0xff] %vm2315_vm0, %v2099_v31  ;;  %v112_v31 = vld [vmem:[%s5509_s0 + $0x328] sm:$0xff] }
 0x13a   :  { %1184 = vperm.xlu2 %2611, %v418_v32   ;;  %v102_v32 = vld [vmem:[%s5509_s0 + $0x2d8] sm:$0xff] }
 0x13b   :  { %1179 = vperm.xlu1 %2610, %v417_v33   ;;  %1174 = vperm.xlu0 %2609, %v416_v34   ;;  %v101_v33 = vld [vmem:[%s5509_s0 + $0x2d0] sm:$0xff] }
 0x13c   :  { %v1020_v38 = vpop.permute.xlu2 %1019 }
 0x13d   :  { %v2113_v39 = vmul.f32 %v1020_v38, %v97_v35  ;;  %v970_v40 = vpop.permute.xlu1 %969  ;;  %v965_v41 = vpop.permute.xlu0 %964 }
 0x13e   :  { %v2103_v42 = vmul.f32 %v970_v40, %v87_v36  ;;  %v2102_v43 = vmul.f32 %v965_v41, %v86_v37  ;;  %v436_v40 = vld [vmem:[%s5508_s1 + $0x448] sm:$0xff]  ;;  %v435_v41 = vld [vmem:[%s5508_s1 + $0x440] sm:$0xff] }
 0x13f   :  { %2402 = vst.msk [vmem:[%s5510_s2 + $0x2b0] sm:$0xff] %vm2315_vm0, %v2113_v39 }
 0x140   :  { %2392 = vst.msk [vmem:[%s5510_s2 + $0x260] sm:$0xff] %vm2315_vm0, %v2103_v42  ;;  %v434_v42 = vld [vmem:[%s5508_s1 + $0x438] sm:$0xff] }
 0x141   :  { %2391 = vst.msk [vmem:[%s5510_s2 + $0x258] sm:$0xff] %vm2315_vm0, %v2102_v43  ;;  %v115_v43 = vld [vmem:[%s5509_s0 + $0x340] sm:$0xff] }
 0x142   :  { %1199 = vperm.xlu2 %2611, %v421_v44   ;;  %v105_v44 = vld [vmem:[%s5509_s0 + $0x2f0] sm:$0xff] }
 0x143   :  { %1194 = vperm.xlu1 %2610, %v420_v45   ;;  %1189 = vperm.xlu0 %2609, %v419_v46   ;;  %v104_v45 = vld [vmem:[%s5509_s0 + $0x2e8] sm:$0xff] }
 0x144   :  { %v1035_v50 = vpop.permute.xlu2 %1034 }
 0x145   :  { %v2116_v51 = vmul.f32 %v1035_v50, %v100_v47  ;;  %v985_v52 = vpop.permute.xlu1 %984  ;;  %v980_v53 = vpop.permute.xlu0 %979 }
 0x146   :  { %v2106_v54 = vmul.f32 %v985_v52, %v90_v48  ;;  %v2105_v55 = vmul.f32 %v980_v53, %v89_v49  ;;  %v439_v52 = vld [vmem:[%s5508_s1 + $0x460] sm:$0xff]  ;;  %v438_v53 = vld [vmem:[%s5508_s1 + $0x458] sm:$0xff] }
 0x147   :  { %2405 = vst.msk [vmem:[%s5510_s2 + $0x2c8] sm:$0xff] %vm2315_vm0, %v2116_v51 }
 0x148   :  { %2395 = vst.msk [vmem:[%s5510_s2 + $0x278] sm:$0xff] %vm2315_vm0, %v2106_v54  ;;  %v437_v54 = vld [vmem:[%s5508_s1 + $0x450] sm:$0xff] }
 0x149   :  { %2394 = vst.msk [vmem:[%s5510_s2 + $0x270] sm:$0xff] %vm2315_vm0, %v2105_v55  ;;  %v118_v55 = vld [vmem:[%s5509_s0 + $0x358] sm:$0xff] }
 0x14a   :  { %1214 = vperm.xlu2 %2611, %v424_v56   ;;  %v108_v56 = vld [vmem:[%s5509_s0 + $0x308] sm:$0xff] }
 0x14b   :  { %1209 = vperm.xlu1 %2610, %v423_v57   ;;  %1204 = vperm.xlu0 %2609, %v422_v58   ;;  %v107_v57 = vld [vmem:[%s5509_s0 + $0x300] sm:$0xff] }
 0x14c   :  { %v1050_v62 = vpop.permute.xlu2 %1049 }
 0x14d   :  { %v2119_v63 = vmul.f32 %v1050_v62, %v103_v59  ;;  %v1000_v0 = vpop.permute.xlu1 %999  ;;  %v995_v1 = vpop.permute.xlu0 %994 }
 0x14e   :  { %v2109_v2 = vmul.f32 %v1000_v0, %v93_v60  ;;  %v2108_v3 = vmul.f32 %v995_v1, %v92_v61  ;;  %v442_v0 = vld [vmem:[%s5508_s1 + $0x478] sm:$0xff]  ;;  %v441_v1 = vld [vmem:[%s5508_s1 + $0x470] sm:$0xff] }
 0x14f   :  { %2408 = vst.msk [vmem:[%s5510_s2 + $0x2e0] sm:$0xff] %vm2315_vm0, %v2119_v63 }
 0x150   :  { %2398 = vst.msk [vmem:[%s5510_s2 + $0x290] sm:$0xff] %vm2315_vm0, %v2109_v2  ;;  %v440_v2 = vld [vmem:[%s5508_s1 + $0x468] sm:$0xff] }
 0x151   :  { %2397 = vst.msk [vmem:[%s5510_s2 + $0x288] sm:$0xff] %vm2315_vm0, %v2108_v3  ;;  %v121_v3 = vld [vmem:[%s5509_s0 + $0x370] sm:$0xff] }
 0x152   :  { %1229 = vperm.xlu2 %2611, %v427_v4   ;;  %v111_v4 = vld [vmem:[%s5509_s0 + $0x320] sm:$0xff] }
 0x153   :  { %1224 = vperm.xlu1 %2610, %v426_v5   ;;  %1219 = vperm.xlu0 %2609, %v425_v6   ;;  %v110_v5 = vld [vmem:[%s5509_s0 + $0x318] sm:$0xff] }
 0x154   :  { %v1065_v10 = vpop.permute.xlu2 %1064 }
 0x155   :  { %v2122_v11 = vmul.f32 %v1065_v10, %v106_v7  ;;  %v1015_v12 = vpop.permute.xlu1 %1014  ;;  %v1010_v13 = vpop.permute.xlu0 %1009 }
 0x156   :  { %v2112_v14 = vmul.f32 %v1015_v12, %v96_v8  ;;  %v2111_v15 = vmul.f32 %v1010_v13, %v95_v9  ;;  %v445_v12 = vld [vmem:[%s5508_s1 + $0x490] sm:$0xff]  ;;  %v444_v13 = vld [vmem:[%s5508_s1 + $0x488] sm:$0xff] }
 0x157   :  { %2411 = vst.msk [vmem:[%s5510_s2 + $0x2f8] sm:$0xff] %vm2315_vm0, %v2122_v11 }
 0x158   :  { %2401 = vst.msk [vmem:[%s5510_s2 + $0x2a8] sm:$0xff] %vm2315_vm0, %v2112_v14  ;;  %v443_v14 = vld [vmem:[%s5508_s1 + $0x480] sm:$0xff] }
 0x159   :  { %2400 = vst.msk [vmem:[%s5510_s2 + $0x2a0] sm:$0xff] %vm2315_vm0, %v2111_v15  ;;  %v124_v15 = vld [vmem:[%s5509_s0 + $0x388] sm:$0xff] }
 0x15a   :  { %1244 = vperm.xlu2 %2611, %v430_v16   ;;  %v114_v16 = vld [vmem:[%s5509_s0 + $0x338] sm:$0xff] }
 0x15b   :  { %1239 = vperm.xlu1 %2610, %v429_v17   ;;  %1234 = vperm.xlu0 %2609, %v428_v18   ;;  %v113_v17 = vld [vmem:[%s5509_s0 + $0x330] sm:$0xff] }
 0x15c   :  { %v1080_v22 = vpop.permute.xlu2 %1079 }
 0x15d   :  { %v2125_v23 = vmul.f32 %v1080_v22, %v109_v19  ;;  %v1030_v24 = vpop.permute.xlu1 %1029  ;;  %v1025_v25 = vpop.permute.xlu0 %1024 }
 0x15e   :  { %v2115_v26 = vmul.f32 %v1030_v24, %v99_v20  ;;  %v2114_v27 = vmul.f32 %v1025_v25, %v98_v21  ;;  %v448_v24 = vld [vmem:[%s5508_s1 + $0x4a8] sm:$0xff]  ;;  %v447_v25 = vld [vmem:[%s5508_s1 + $0x4a0] sm:$0xff] }
 0x15f   :  { %2414 = vst.msk [vmem:[%s5510_s2 + $0x310] sm:$0xff] %vm2315_vm0, %v2125_v23 }
 0x160   :  { %2404 = vst.msk [vmem:[%s5510_s2 + $0x2c0] sm:$0xff] %vm2315_vm0, %v2115_v26  ;;  %v446_v26 = vld [vmem:[%s5508_s1 + $0x498] sm:$0xff] }
 0x161   :  { %2403 = vst.msk [vmem:[%s5510_s2 + $0x2b8] sm:$0xff] %vm2315_vm0, %v2114_v27  ;;  %v127_v27 = vld [vmem:[%s5509_s0 + $0x3a0] sm:$0xff] }
 0x162   :  { %1259 = vperm.xlu2 %2611, %v433_v28   ;;  %v117_v28 = vld [vmem:[%s5509_s0 + $0x350] sm:$0xff] }
 0x163   :  { %1254 = vperm.xlu1 %2610, %v432_v29   ;;  %1249 = vperm.xlu0 %2609, %v431_v30   ;;  %v116_v29 = vld [vmem:[%s5509_s0 + $0x348] sm:$0xff] }
 0x164   :  { %v1095_v34 = vpop.permute.xlu2 %1094 }
 0x165   :  { %v2128_v35 = vmul.f32 %v1095_v34, %v112_v31  ;;  %v1045_v36 = vpop.permute.xlu1 %1044  ;;  %v1040_v37 = vpop.permute.xlu0 %1039 }
 0x166   :  { %v2118_v38 = vmul.f32 %v1045_v36, %v102_v32  ;;  %v2117_v39 = vmul.f32 %v1040_v37, %v101_v33  ;;  %v451_v36 = vld [vmem:[%s5508_s1 + $0x4c0] sm:$0xff]  ;;  %v450_v37 = vld [vmem:[%s5508_s1 + $0x4b8] sm:$0xff] }
 0x167   :  { %2417 = vst.msk [vmem:[%s5510_s2 + $0x328] sm:$0xff] %vm2315_vm0, %v2128_v35 }
 0x168   :  { %2407 = vst.msk [vmem:[%s5510_s2 + $0x2d8] sm:$0xff] %vm2315_vm0, %v2118_v38  ;;  %v449_v38 = vld [vmem:[%s5508_s1 + $0x4b0] sm:$0xff] }
 0x169   :  { %2406 = vst.msk [vmem:[%s5510_s2 + $0x2d0] sm:$0xff] %vm2315_vm0, %v2117_v39  ;;  %v130_v39 = vld [vmem:[%s5509_s0 + $0x3b8] sm:$0xff] }
 0x16a   :  { %1274 = vperm.xlu2 %2611, %v436_v40   ;;  %v120_v40 = vld [vmem:[%s5509_s0 + $0x368] sm:$0xff] }
 0x16b   :  { %1269 = vperm.xlu1 %2610, %v435_v41   ;;  %1264 = vperm.xlu0 %2609, %v434_v42   ;;  %v119_v41 = vld [vmem:[%s5509_s0 + $0x360] sm:$0xff] }
 0x16c   :  { %v1110_v46 = vpop.permute.xlu2 %1109 }
 0x16d   :  { %v2131_v47 = vmul.f32 %v1110_v46, %v115_v43  ;;  %v1060_v48 = vpop.permute.xlu1 %1059  ;;  %v1055_v49 = vpop.permute.xlu0 %1054 }
 0x16e   :  { %v2121_v50 = vmul.f32 %v1060_v48, %v105_v44  ;;  %v2120_v51 = vmul.f32 %v1055_v49, %v104_v45  ;;  %v454_v48 = vld [vmem:[%s5508_s1 + $0x4d8] sm:$0xff]  ;;  %v453_v49 = vld [vmem:[%s5508_s1 + $0x4d0] sm:$0xff] }
 0x16f   :  { %2420 = vst.msk [vmem:[%s5510_s2 + $0x340] sm:$0xff] %vm2315_vm0, %v2131_v47 }
 0x170   :  { %2410 = vst.msk [vmem:[%s5510_s2 + $0x2f0] sm:$0xff] %vm2315_vm0, %v2121_v50  ;;  %v452_v50 = vld [vmem:[%s5508_s1 + $0x4c8] sm:$0xff] }
 0x171   :  { %2409 = vst.msk [vmem:[%s5510_s2 + $0x2e8] sm:$0xff] %vm2315_vm0, %v2120_v51  ;;  %v133_v51 = vld [vmem:[%s5509_s0 + $0x3d0] sm:$0xff] }
 0x172   :  { %1289 = vperm.xlu2 %2611, %v439_v52   ;;  %v123_v52 = vld [vmem:[%s5509_s0 + $0x380] sm:$0xff] }
 0x173   :  { %1284 = vperm.xlu1 %2610, %v438_v53   ;;  %1279 = vperm.xlu0 %2609, %v437_v54   ;;  %v122_v53 = vld [vmem:[%s5509_s0 + $0x378] sm:$0xff] }
 0x174   :  { %v1125_v58 = vpop.permute.xlu2 %1124 }
 0x175   :  { %v2134_v59 = vmul.f32 %v1125_v58, %v118_v55  ;;  %v1075_v60 = vpop.permute.xlu1 %1074  ;;  %v1070_v61 = vpop.permute.xlu0 %1069 }
 0x176   :  { %v2124_v62 = vmul.f32 %v1075_v60, %v108_v56  ;;  %v2123_v63 = vmul.f32 %v1070_v61, %v107_v57  ;;  %v457_v60 = vld [vmem:[%s5508_s1 + $0x4f0] sm:$0xff]  ;;  %v456_v61 = vld [vmem:[%s5508_s1 + $0x4e8] sm:$0xff] }
 0x177   :  { %2423 = vst.msk [vmem:[%s5510_s2 + $0x358] sm:$0xff] %vm2315_vm0, %v2134_v59 }
 0x178   :  { %2413 = vst.msk [vmem:[%s5510_s2 + $0x308] sm:$0xff] %vm2315_vm0, %v2124_v62  ;;  %v455_v62 = vld [vmem:[%s5508_s1 + $0x4e0] sm:$0xff] }
 0x179   :  { %2412 = vst.msk [vmem:[%s5510_s2 + $0x300] sm:$0xff] %vm2315_vm0, %v2123_v63  ;;  %v136_v63 = vld [vmem:[%s5509_s0 + $0x3e8] sm:$0xff] }
 0x17a   :  { %1304 = vperm.xlu2 %2611, %v442_v0   ;;  %v126_v0 = vld [vmem:[%s5509_s0 + $0x398] sm:$0xff] }
 0x17b   :  { %1299 = vperm.xlu1 %2610, %v441_v1   ;;  %1294 = vperm.xlu0 %2609, %v440_v2   ;;  %v125_v1 = vld [vmem:[%s5509_s0 + $0x390] sm:$0xff] }
 0x17c   :  { %v1140_v6 = vpop.permute.xlu2 %1139 }
 0x17d   :  { %v2137_v7 = vmul.f32 %v1140_v6, %v121_v3  ;;  %v1090_v8 = vpop.permute.xlu1 %1089  ;;  %v1085_v9 = vpop.permute.xlu0 %1084 }
 0x17e   :  { %v2127_v10 = vmul.f32 %v1090_v8, %v111_v4  ;;  %v2126_v11 = vmul.f32 %v1085_v9, %v110_v5  ;;  %v460_v8 = vld [vmem:[%s5508_s1 + $0x508] sm:$0xff]  ;;  %v459_v9 = vld [vmem:[%s5508_s1 + $0x500] sm:$0xff] }
 0x17f   :  { %2426 = vst.msk [vmem:[%s5510_s2 + $0x370] sm:$0xff] %vm2315_vm0, %v2137_v7 }
 0x180   :  { %2416 = vst.msk [vmem:[%s5510_s2 + $0x320] sm:$0xff] %vm2315_vm0, %v2127_v10  ;;  %v458_v10 = vld [vmem:[%s5508_s1 + $0x4f8] sm:$0xff] }
 0x181   :  { %2415 = vst.msk [vmem:[%s5510_s2 + $0x318] sm:$0xff] %vm2315_vm0, %v2126_v11  ;;  %v139_v11 = vld [vmem:[%s5509_s0 + $0x400] sm:$0xff] }
 0x182   :  { %1319 = vperm.xlu2 %2611, %v445_v12   ;;  %v129_v12 = vld [vmem:[%s5509_s0 + $0x3b0] sm:$0xff] }
 0x183   :  { %1314 = vperm.xlu1 %2610, %v444_v13   ;;  %1309 = vperm.xlu0 %2609, %v443_v14   ;;  %v128_v13 = vld [vmem:[%s5509_s0 + $0x3a8] sm:$0xff] }
 0x184   :  { %v1155_v18 = vpop.permute.xlu2 %1154 }
 0x185   :  { %v2140_v19 = vmul.f32 %v1155_v18, %v124_v15  ;;  %v1105_v20 = vpop.permute.xlu1 %1104  ;;  %v1100_v21 = vpop.permute.xlu0 %1099 }
 0x186   :  { %v2130_v22 = vmul.f32 %v1105_v20, %v114_v16  ;;  %v2129_v23 = vmul.f32 %v1100_v21, %v113_v17  ;;  %v463_v20 = vld [vmem:[%s5508_s1 + $0x520] sm:$0xff]  ;;  %v462_v21 = vld [vmem:[%s5508_s1 + $0x518] sm:$0xff] }
 0x187   :  { %2429 = vst.msk [vmem:[%s5510_s2 + $0x388] sm:$0xff] %vm2315_vm0, %v2140_v19 }
 0x188   :  { %2419 = vst.msk [vmem:[%s5510_s2 + $0x338] sm:$0xff] %vm2315_vm0, %v2130_v22  ;;  %v461_v22 = vld [vmem:[%s5508_s1 + $0x510] sm:$0xff] }
 0x189   :  { %2418 = vst.msk [vmem:[%s5510_s2 + $0x330] sm:$0xff] %vm2315_vm0, %v2129_v23  ;;  %v142_v23 = vld [vmem:[%s5509_s0 + $0x418] sm:$0xff] }
 0x18a   :  { %1334 = vperm.xlu2 %2611, %v448_v24   ;;  %v132_v24 = vld [vmem:[%s5509_s0 + $0x3c8] sm:$0xff] }
 0x18b   :  { %1329 = vperm.xlu1 %2610, %v447_v25   ;;  %1324 = vperm.xlu0 %2609, %v446_v26   ;;  %v131_v25 = vld [vmem:[%s5509_s0 + $0x3c0] sm:$0xff] }
 0x18c   :  { %v1170_v30 = vpop.permute.xlu2 %1169 }
 0x18d   :  { %v2143_v31 = vmul.f32 %v1170_v30, %v127_v27  ;;  %v1120_v32 = vpop.permute.xlu1 %1119  ;;  %v1115_v33 = vpop.permute.xlu0 %1114 }
 0x18e   :  { %v2133_v34 = vmul.f32 %v1120_v32, %v117_v28  ;;  %v2132_v35 = vmul.f32 %v1115_v33, %v116_v29  ;;  %v466_v32 = vld [vmem:[%s5508_s1 + $0x538] sm:$0xff]  ;;  %v465_v33 = vld [vmem:[%s5508_s1 + $0x530] sm:$0xff] }
 0x18f   :  { %2432 = vst.msk [vmem:[%s5510_s2 + $0x3a0] sm:$0xff] %vm2315_vm0, %v2143_v31 }
 0x190   :  { %2422 = vst.msk [vmem:[%s5510_s2 + $0x350] sm:$0xff] %vm2315_vm0, %v2133_v34  ;;  %v464_v34 = vld [vmem:[%s5508_s1 + $0x528] sm:$0xff] }
 0x191   :  { %2421 = vst.msk [vmem:[%s5510_s2 + $0x348] sm:$0xff] %vm2315_vm0, %v2132_v35  ;;  %v145_v35 = vld [vmem:[%s5509_s0 + $0x430] sm:$0xff] }
 0x192   :  { %1349 = vperm.xlu2 %2611, %v451_v36   ;;  %v135_v36 = vld [vmem:[%s5509_s0 + $0x3e0] sm:$0xff] }
 0x193   :  { %1344 = vperm.xlu1 %2610, %v450_v37   ;;  %1339 = vperm.xlu0 %2609, %v449_v38   ;;  %v134_v37 = vld [vmem:[%s5509_s0 + $0x3d8] sm:$0xff] }
 0x194   :  { %v1185_v42 = vpop.permute.xlu2 %1184 }
 0x195   :  { %v2146_v43 = vmul.f32 %v1185_v42, %v130_v39  ;;  %v1135_v44 = vpop.permute.xlu1 %1134  ;;  %v1130_v45 = vpop.permute.xlu0 %1129 }
 0x196   :  { %v2136_v46 = vmul.f32 %v1135_v44, %v120_v40  ;;  %v2135_v47 = vmul.f32 %v1130_v45, %v119_v41  ;;  %v469_v44 = vld [vmem:[%s5508_s1 + $0x550] sm:$0xff]  ;;  %v468_v45 = vld [vmem:[%s5508_s1 + $0x548] sm:$0xff] }
 0x197   :  { %2435 = vst.msk [vmem:[%s5510_s2 + $0x3b8] sm:$0xff] %vm2315_vm0, %v2146_v43 }
 0x198   :  { %2425 = vst.msk [vmem:[%s5510_s2 + $0x368] sm:$0xff] %vm2315_vm0, %v2136_v46  ;;  %v467_v46 = vld [vmem:[%s5508_s1 + $0x540] sm:$0xff] }
 0x199   :  { %2424 = vst.msk [vmem:[%s5510_s2 + $0x360] sm:$0xff] %vm2315_vm0, %v2135_v47  ;;  %v148_v47 = vld [vmem:[%s5509_s0 + $0x448] sm:$0xff] }
 0x19a   :  { %1364 = vperm.xlu2 %2611, %v454_v48   ;;  %v138_v48 = vld [vmem:[%s5509_s0 + $0x3f8] sm:$0xff] }
 0x19b   :  { %1359 = vperm.xlu1 %2610, %v453_v49   ;;  %1354 = vperm.xlu0 %2609, %v452_v50   ;;  %v137_v49 = vld [vmem:[%s5509_s0 + $0x3f0] sm:$0xff] }
 0x19c   :  { %v1200_v54 = vpop.permute.xlu2 %1199 }
 0x19d   :  { %v2149_v55 = vmul.f32 %v1200_v54, %v133_v51  ;;  %v1150_v56 = vpop.permute.xlu1 %1149  ;;  %v1145_v57 = vpop.permute.xlu0 %1144 }
 0x19e   :  { %v2139_v58 = vmul.f32 %v1150_v56, %v123_v52  ;;  %v2138_v59 = vmul.f32 %v1145_v57, %v122_v53  ;;  %v472_v56 = vld [vmem:[%s5508_s1 + $0x568] sm:$0xff]  ;;  %v471_v57 = vld [vmem:[%s5508_s1 + $0x560] sm:$0xff] }
 0x19f   :  { %2438 = vst.msk [vmem:[%s5510_s2 + $0x3d0] sm:$0xff] %vm2315_vm0, %v2149_v55 }
 0x1a0   :  { %2428 = vst.msk [vmem:[%s5510_s2 + $0x380] sm:$0xff] %vm2315_vm0, %v2139_v58  ;;  %v470_v58 = vld [vmem:[%s5508_s1 + $0x558] sm:$0xff] }
 0x1a1   :  { %2427 = vst.msk [vmem:[%s5510_s2 + $0x378] sm:$0xff] %vm2315_vm0, %v2138_v59  ;;  %v151_v59 = vld [vmem:[%s5509_s0 + $0x460] sm:$0xff] }
 0x1a2   :  { %1379 = vperm.xlu2 %2611, %v457_v60   ;;  %v141_v60 = vld [vmem:[%s5509_s0 + $0x410] sm:$0xff] }
 0x1a3   :  { %1374 = vperm.xlu1 %2610, %v456_v61   ;;  %1369 = vperm.xlu0 %2609, %v455_v62   ;;  %v140_v61 = vld [vmem:[%s5509_s0 + $0x408] sm:$0xff] }
 0x1a4   :  { %v1215_v2 = vpop.permute.xlu2 %1214 }
 0x1a5   :  { %v2152_v3 = vmul.f32 %v1215_v2, %v136_v63  ;;  %v1165_v4 = vpop.permute.xlu1 %1164  ;;  %v1160_v5 = vpop.permute.xlu0 %1159 }
 0x1a6   :  { %v2142_v6 = vmul.f32 %v1165_v4, %v126_v0  ;;  %v2141_v7 = vmul.f32 %v1160_v5, %v125_v1  ;;  %v475_v4 = vld [vmem:[%s5508_s1 + $0x580] sm:$0xff]  ;;  %v474_v5 = vld [vmem:[%s5508_s1 + $0x578] sm:$0xff] }
 0x1a7   :  { %2441 = vst.msk [vmem:[%s5510_s2 + $0x3e8] sm:$0xff] %vm2315_vm0, %v2152_v3 }
 0x1a8   :  { %2431 = vst.msk [vmem:[%s5510_s2 + $0x398] sm:$0xff] %vm2315_vm0, %v2142_v6  ;;  %v473_v6 = vld [vmem:[%s5508_s1 + $0x570] sm:$0xff] }
 0x1a9   :  { %2430 = vst.msk [vmem:[%s5510_s2 + $0x390] sm:$0xff] %vm2315_vm0, %v2141_v7  ;;  %v154_v7 = vld [vmem:[%s5509_s0 + $0x478] sm:$0xff] }
 0x1aa   :  { %1394 = vperm.xlu2 %2611, %v460_v8   ;;  %v144_v8 = vld [vmem:[%s5509_s0 + $0x428] sm:$0xff] }
 0x1ab   :  { %1389 = vperm.xlu1 %2610, %v459_v9   ;;  %1384 = vperm.xlu0 %2609, %v458_v10   ;;  %v143_v9 = vld [vmem:[%s5509_s0 + $0x420] sm:$0xff] }
 0x1ac   :  { %v1230_v14 = vpop.permute.xlu2 %1229 }
 0x1ad   :  { %v2155_v15 = vmul.f32 %v1230_v14, %v139_v11  ;;  %v1180_v16 = vpop.permute.xlu1 %1179  ;;  %v1175_v17 = vpop.permute.xlu0 %1174 }
 0x1ae   :  { %v2145_v18 = vmul.f32 %v1180_v16, %v129_v12  ;;  %v2144_v19 = vmul.f32 %v1175_v17, %v128_v13  ;;  %v478_v16 = vld [vmem:[%s5508_s1 + $0x598] sm:$0xff]  ;;  %v477_v17 = vld [vmem:[%s5508_s1 + $0x590] sm:$0xff] }
 0x1af   :  { %2444 = vst.msk [vmem:[%s5510_s2 + $0x400] sm:$0xff] %vm2315_vm0, %v2155_v15 }
 0x1b0   :  { %2434 = vst.msk [vmem:[%s5510_s2 + $0x3b0] sm:$0xff] %vm2315_vm0, %v2145_v18  ;;  %v476_v18 = vld [vmem:[%s5508_s1 + $0x588] sm:$0xff] }
 0x1b1   :  { %2433 = vst.msk [vmem:[%s5510_s2 + $0x3a8] sm:$0xff] %vm2315_vm0, %v2144_v19  ;;  %v157_v19 = vld [vmem:[%s5509_s0 + $0x490] sm:$0xff] }
 0x1b2   :  { %1409 = vperm.xlu2 %2611, %v463_v20   ;;  %v147_v20 = vld [vmem:[%s5509_s0 + $0x440] sm:$0xff] }
 0x1b3   :  { %1404 = vperm.xlu1 %2610, %v462_v21   ;;  %1399 = vperm.xlu0 %2609, %v461_v22   ;;  %v146_v21 = vld [vmem:[%s5509_s0 + $0x438] sm:$0xff] }
 0x1b4   :  { %v1245_v26 = vpop.permute.xlu2 %1244 }
 0x1b5   :  { %v2158_v27 = vmul.f32 %v1245_v26, %v142_v23  ;;  %v1195_v28 = vpop.permute.xlu1 %1194  ;;  %v1190_v29 = vpop.permute.xlu0 %1189 }
 0x1b6   :  { %v2148_v30 = vmul.f32 %v1195_v28, %v132_v24  ;;  %v2147_v31 = vmul.f32 %v1190_v29, %v131_v25  ;;  %v481_v28 = vld [vmem:[%s5508_s1 + $0x5b0] sm:$0xff]  ;;  %v480_v29 = vld [vmem:[%s5508_s1 + $0x5a8] sm:$0xff] }
 0x1b7   :  { %2447 = vst.msk [vmem:[%s5510_s2 + $0x418] sm:$0xff] %vm2315_vm0, %v2158_v27 }
 0x1b8   :  { %2437 = vst.msk [vmem:[%s5510_s2 + $0x3c8] sm:$0xff] %vm2315_vm0, %v2148_v30  ;;  %v479_v30 = vld [vmem:[%s5508_s1 + $0x5a0] sm:$0xff] }
 0x1b9   :  { %2436 = vst.msk [vmem:[%s5510_s2 + $0x3c0] sm:$0xff] %vm2315_vm0, %v2147_v31  ;;  %v160_v31 = vld [vmem:[%s5509_s0 + $0x4a8] sm:$0xff] }
 0x1ba   :  { %1424 = vperm.xlu2 %2611, %v466_v32   ;;  %v150_v32 = vld [vmem:[%s5509_s0 + $0x458] sm:$0xff] }
 0x1bb   :  { %1419 = vperm.xlu1 %2610, %v465_v33   ;;  %1414 = vperm.xlu0 %2609, %v464_v34   ;;  %v149_v33 = vld [vmem:[%s5509_s0 + $0x450] sm:$0xff] }
 0x1bc   :  { %v1260_v38 = vpop.permute.xlu2 %1259 }
 0x1bd   :  { %v2161_v39 = vmul.f32 %v1260_v38, %v145_v35  ;;  %v1210_v40 = vpop.permute.xlu1 %1209  ;;  %v1205_v41 = vpop.permute.xlu0 %1204 }
 0x1be   :  { %v2151_v42 = vmul.f32 %v1210_v40, %v135_v36  ;;  %v2150_v43 = vmul.f32 %v1205_v41, %v134_v37  ;;  %v484_v40 = vld [vmem:[%s5508_s1 + $0x5c8] sm:$0xff]  ;;  %v483_v41 = vld [vmem:[%s5508_s1 + $0x5c0] sm:$0xff] }
 0x1bf   :  { %2450 = vst.msk [vmem:[%s5510_s2 + $0x430] sm:$0xff] %vm2315_vm0, %v2161_v39 }
 0x1c0   :  { %2440 = vst.msk [vmem:[%s5510_s2 + $0x3e0] sm:$0xff] %vm2315_vm0, %v2151_v42  ;;  %v482_v42 = vld [vmem:[%s5508_s1 + $0x5b8] sm:$0xff] }
 0x1c1   :  { %2439 = vst.msk [vmem:[%s5510_s2 + $0x3d8] sm:$0xff] %vm2315_vm0, %v2150_v43  ;;  %v163_v43 = vld [vmem:[%s5509_s0 + $0x4c0] sm:$0xff] }
 0x1c2   :  { %1439 = vperm.xlu2 %2611, %v469_v44   ;;  %v153_v44 = vld [vmem:[%s5509_s0 + $0x470] sm:$0xff] }
 0x1c3   :  { %1434 = vperm.xlu1 %2610, %v468_v45   ;;  %1429 = vperm.xlu0 %2609, %v467_v46   ;;  %v152_v45 = vld [vmem:[%s5509_s0 + $0x468] sm:$0xff] }
 0x1c4   :  { %v1275_v50 = vpop.permute.xlu2 %1274 }
 0x1c5   :  { %v2164_v51 = vmul.f32 %v1275_v50, %v148_v47  ;;  %v1225_v52 = vpop.permute.xlu1 %1224  ;;  %v1220_v53 = vpop.permute.xlu0 %1219 }
 0x1c6   :  { %v2154_v54 = vmul.f32 %v1225_v52, %v138_v48  ;;  %v2153_v55 = vmul.f32 %v1220_v53, %v137_v49  ;;  %v487_v52 = vld [vmem:[%s5508_s1 + $0x5e0] sm:$0xff]  ;;  %v486_v53 = vld [vmem:[%s5508_s1 + $0x5d8] sm:$0xff] }
 0x1c7   :  { %2453 = vst.msk [vmem:[%s5510_s2 + $0x448] sm:$0xff] %vm2315_vm0, %v2164_v51 }
 0x1c8   :  { %2443 = vst.msk [vmem:[%s5510_s2 + $0x3f8] sm:$0xff] %vm2315_vm0, %v2154_v54  ;;  %v485_v54 = vld [vmem:[%s5508_s1 + $0x5d0] sm:$0xff] }
 0x1c9   :  { %2442 = vst.msk [vmem:[%s5510_s2 + $0x3f0] sm:$0xff] %vm2315_vm0, %v2153_v55  ;;  %v166_v55 = vld [vmem:[%s5509_s0 + $0x4d8] sm:$0xff] }
 0x1ca   :  { %1454 = vperm.xlu2 %2611, %v472_v56   ;;  %v156_v56 = vld [vmem:[%s5509_s0 + $0x488] sm:$0xff] }
 0x1cb   :  { %1449 = vperm.xlu1 %2610, %v471_v57   ;;  %1444 = vperm.xlu0 %2609, %v470_v58   ;;  %v155_v57 = vld [vmem:[%s5509_s0 + $0x480] sm:$0xff] }
 0x1cc   :  { %v1290_v62 = vpop.permute.xlu2 %1289 }
 0x1cd   :  { %v2167_v63 = vmul.f32 %v1290_v62, %v151_v59  ;;  %v1240_v0 = vpop.permute.xlu1 %1239  ;;  %v1235_v1 = vpop.permute.xlu0 %1234 }
 0x1ce   :  { %v2157_v2 = vmul.f32 %v1240_v0, %v141_v60  ;;  %v2156_v3 = vmul.f32 %v1235_v1, %v140_v61  ;;  %v490_v0 = vld [vmem:[%s5508_s1 + $0x5f8] sm:$0xff]  ;;  %v489_v1 = vld [vmem:[%s5508_s1 + $0x5f0] sm:$0xff] }
 0x1cf   :  { %2456 = vst.msk [vmem:[%s5510_s2 + $0x460] sm:$0xff] %vm2315_vm0, %v2167_v63 }
 0x1d0   :  { %2446 = vst.msk [vmem:[%s5510_s2 + $0x410] sm:$0xff] %vm2315_vm0, %v2157_v2  ;;  %v488_v2 = vld [vmem:[%s5508_s1 + $0x5e8] sm:$0xff] }
 0x1d1   :  { %2445 = vst.msk [vmem:[%s5510_s2 + $0x408] sm:$0xff] %vm2315_vm0, %v2156_v3  ;;  %v169_v3 = vld [vmem:[%s5509_s0 + $0x4f0] sm:$0xff] }
 0x1d2   :  { %1469 = vperm.xlu2 %2611, %v475_v4   ;;  %v159_v4 = vld [vmem:[%s5509_s0 + $0x4a0] sm:$0xff] }
 0x1d3   :  { %1464 = vperm.xlu1 %2610, %v474_v5   ;;  %1459 = vperm.xlu0 %2609, %v473_v6   ;;  %v158_v5 = vld [vmem:[%s5509_s0 + $0x498] sm:$0xff] }
 0x1d4   :  { %v1305_v10 = vpop.permute.xlu2 %1304 }
 0x1d5   :  { %v2170_v11 = vmul.f32 %v1305_v10, %v154_v7  ;;  %v1255_v12 = vpop.permute.xlu1 %1254  ;;  %v1250_v13 = vpop.permute.xlu0 %1249 }
 0x1d6   :  { %v2160_v14 = vmul.f32 %v1255_v12, %v144_v8  ;;  %v2159_v15 = vmul.f32 %v1250_v13, %v143_v9  ;;  %v493_v12 = vld [vmem:[%s5508_s1 + $0x610] sm:$0xff]  ;;  %v492_v13 = vld [vmem:[%s5508_s1 + $0x608] sm:$0xff] }
 0x1d7   :  { %2459 = vst.msk [vmem:[%s5510_s2 + $0x478] sm:$0xff] %vm2315_vm0, %v2170_v11 }
 0x1d8   :  { %2449 = vst.msk [vmem:[%s5510_s2 + $0x428] sm:$0xff] %vm2315_vm0, %v2160_v14  ;;  %v491_v14 = vld [vmem:[%s5508_s1 + $0x600] sm:$0xff] }
 0x1d9   :  { %2448 = vst.msk [vmem:[%s5510_s2 + $0x420] sm:$0xff] %vm2315_vm0, %v2159_v15  ;;  %v172_v15 = vld [vmem:[%s5509_s0 + $0x508] sm:$0xff] }
 0x1da   :  { %1484 = vperm.xlu2 %2611, %v478_v16   ;;  %v162_v16 = vld [vmem:[%s5509_s0 + $0x4b8] sm:$0xff] }
 0x1db   :  { %1479 = vperm.xlu1 %2610, %v477_v17   ;;  %1474 = vperm.xlu0 %2609, %v476_v18   ;;  %v161_v17 = vld [vmem:[%s5509_s0 + $0x4b0] sm:$0xff] }
 0x1dc   :  { %v1320_v22 = vpop.permute.xlu2 %1319 }
 0x1dd   :  { %v2173_v23 = vmul.f32 %v1320_v22, %v157_v19  ;;  %v1270_v24 = vpop.permute.xlu1 %1269  ;;  %v1265_v25 = vpop.permute.xlu0 %1264 }
 0x1de   :  { %v2163_v26 = vmul.f32 %v1270_v24, %v147_v20  ;;  %v2162_v27 = vmul.f32 %v1265_v25, %v146_v21  ;;  %v496_v24 = vld [vmem:[%s5508_s1 + $0x628] sm:$0xff]  ;;  %v495_v25 = vld [vmem:[%s5508_s1 + $0x620] sm:$0xff] }
 0x1df   :  { %2462 = vst.msk [vmem:[%s5510_s2 + $0x490] sm:$0xff] %vm2315_vm0, %v2173_v23 }
 0x1e0   :  { %2452 = vst.msk [vmem:[%s5510_s2 + $0x440] sm:$0xff] %vm2315_vm0, %v2163_v26  ;;  %v494_v26 = vld [vmem:[%s5508_s1 + $0x618] sm:$0xff] }
 0x1e1   :  { %2451 = vst.msk [vmem:[%s5510_s2 + $0x438] sm:$0xff] %vm2315_vm0, %v2162_v27  ;;  %v175_v27 = vld [vmem:[%s5509_s0 + $0x520] sm:$0xff] }
 0x1e2   :  { %1499 = vperm.xlu2 %2611, %v481_v28   ;;  %v165_v28 = vld [vmem:[%s5509_s0 + $0x4d0] sm:$0xff] }
 0x1e3   :  { %1494 = vperm.xlu1 %2610, %v480_v29   ;;  %1489 = vperm.xlu0 %2609, %v479_v30   ;;  %v164_v29 = vld [vmem:[%s5509_s0 + $0x4c8] sm:$0xff] }
 0x1e4   :  { %v1335_v34 = vpop.permute.xlu2 %1334 }
 0x1e5   :  { %v2176_v35 = vmul.f32 %v1335_v34, %v160_v31  ;;  %v1285_v36 = vpop.permute.xlu1 %1284  ;;  %v1280_v37 = vpop.permute.xlu0 %1279 }
 0x1e6   :  { %v2166_v38 = vmul.f32 %v1285_v36, %v150_v32  ;;  %v2165_v39 = vmul.f32 %v1280_v37, %v149_v33  ;;  %v499_v36 = vld [vmem:[%s5508_s1 + $0x640] sm:$0xff]  ;;  %v498_v37 = vld [vmem:[%s5508_s1 + $0x638] sm:$0xff] }
 0x1e7   :  { %2465 = vst.msk [vmem:[%s5510_s2 + $0x4a8] sm:$0xff] %vm2315_vm0, %v2176_v35 }
 0x1e8   :  { %2455 = vst.msk [vmem:[%s5510_s2 + $0x458] sm:$0xff] %vm2315_vm0, %v2166_v38  ;;  %v497_v38 = vld [vmem:[%s5508_s1 + $0x630] sm:$0xff] }
 0x1e9   :  { %2454 = vst.msk [vmem:[%s5510_s2 + $0x450] sm:$0xff] %vm2315_vm0, %v2165_v39  ;;  %v178_v39 = vld [vmem:[%s5509_s0 + $0x538] sm:$0xff] }
 0x1ea   :  { %1514 = vperm.xlu2 %2611, %v484_v40   ;;  %v168_v40 = vld [vmem:[%s5509_s0 + $0x4e8] sm:$0xff] }
 0x1eb   :  { %1509 = vperm.xlu1 %2610, %v483_v41   ;;  %1504 = vperm.xlu0 %2609, %v482_v42   ;;  %v167_v41 = vld [vmem:[%s5509_s0 + $0x4e0] sm:$0xff] }
 0x1ec   :  { %v1350_v46 = vpop.permute.xlu2 %1349 }
 0x1ed   :  { %v2179_v47 = vmul.f32 %v1350_v46, %v163_v43  ;;  %v1300_v48 = vpop.permute.xlu1 %1299  ;;  %v1295_v49 = vpop.permute.xlu0 %1294 }
 0x1ee   :  { %v2169_v50 = vmul.f32 %v1300_v48, %v153_v44  ;;  %v2168_v51 = vmul.f32 %v1295_v49, %v152_v45  ;;  %v502_v48 = vld [vmem:[%s5508_s1 + $0x658] sm:$0xff]  ;;  %v501_v49 = vld [vmem:[%s5508_s1 + $0x650] sm:$0xff] }
 0x1ef   :  { %2468 = vst.msk [vmem:[%s5510_s2 + $0x4c0] sm:$0xff] %vm2315_vm0, %v2179_v47 }
 0x1f0   :  { %2458 = vst.msk [vmem:[%s5510_s2 + $0x470] sm:$0xff] %vm2315_vm0, %v2169_v50  ;;  %v500_v50 = vld [vmem:[%s5508_s1 + $0x648] sm:$0xff] }
 0x1f1   :  { %2457 = vst.msk [vmem:[%s5510_s2 + $0x468] sm:$0xff] %vm2315_vm0, %v2168_v51  ;;  %v181_v51 = vld [vmem:[%s5509_s0 + $0x550] sm:$0xff] }
 0x1f2   :  { %1529 = vperm.xlu2 %2611, %v487_v52   ;;  %v171_v52 = vld [vmem:[%s5509_s0 + $0x500] sm:$0xff] }
 0x1f3   :  { %1524 = vperm.xlu1 %2610, %v486_v53   ;;  %1519 = vperm.xlu0 %2609, %v485_v54   ;;  %v170_v53 = vld [vmem:[%s5509_s0 + $0x4f8] sm:$0xff] }
 0x1f4   :  { %v1365_v58 = vpop.permute.xlu2 %1364 }
 0x1f5   :  { %v2182_v59 = vmul.f32 %v1365_v58, %v166_v55  ;;  %v1315_v60 = vpop.permute.xlu1 %1314  ;;  %v1310_v61 = vpop.permute.xlu0 %1309 }
 0x1f6   :  { %v2172_v62 = vmul.f32 %v1315_v60, %v156_v56  ;;  %v2171_v63 = vmul.f32 %v1310_v61, %v155_v57  ;;  %v505_v60 = vld [vmem:[%s5508_s1 + $0x670] sm:$0xff]  ;;  %v504_v61 = vld [vmem:[%s5508_s1 + $0x668] sm:$0xff] }
 0x1f7   :  { %2471 = vst.msk [vmem:[%s5510_s2 + $0x4d8] sm:$0xff] %vm2315_vm0, %v2182_v59 }
 0x1f8   :  { %2461 = vst.msk [vmem:[%s5510_s2 + $0x488] sm:$0xff] %vm2315_vm0, %v2172_v62  ;;  %v503_v62 = vld [vmem:[%s5508_s1 + $0x660] sm:$0xff] }
 0x1f9   :  { %2460 = vst.msk [vmem:[%s5510_s2 + $0x480] sm:$0xff] %vm2315_vm0, %v2171_v63  ;;  %v184_v63 = vld [vmem:[%s5509_s0 + $0x568] sm:$0xff] }
 0x1fa   :  { %1544 = vperm.xlu2 %2611, %v490_v0   ;;  %v174_v0 = vld [vmem:[%s5509_s0 + $0x518] sm:$0xff] }
 0x1fb   :  { %1539 = vperm.xlu1 %2610, %v489_v1   ;;  %1534 = vperm.xlu0 %2609, %v488_v2   ;;  %v173_v1 = vld [vmem:[%s5509_s0 + $0x510] sm:$0xff] }
 0x1fc   :  { %v1380_v6 = vpop.permute.xlu2 %1379 }
 0x1fd   :  { %v2185_v7 = vmul.f32 %v1380_v6, %v169_v3  ;;  %v1330_v8 = vpop.permute.xlu1 %1329  ;;  %v1325_v9 = vpop.permute.xlu0 %1324 }
 0x1fe   :  { %v2175_v10 = vmul.f32 %v1330_v8, %v159_v4  ;;  %v2174_v11 = vmul.f32 %v1325_v9, %v158_v5  ;;  %v508_v8 = vld [vmem:[%s5508_s1 + $0x688] sm:$0xff]  ;;  %v507_v9 = vld [vmem:[%s5508_s1 + $0x680] sm:$0xff] }
 0x1ff   :  { %2474 = vst.msk [vmem:[%s5510_s2 + $0x4f0] sm:$0xff] %vm2315_vm0, %v2185_v7 }
 0x200   :  { %2464 = vst.msk [vmem:[%s5510_s2 + $0x4a0] sm:$0xff] %vm2315_vm0, %v2175_v10  ;;  %v506_v10 = vld [vmem:[%s5508_s1 + $0x678] sm:$0xff] }
 0x201   :  { %2463 = vst.msk [vmem:[%s5510_s2 + $0x498] sm:$0xff] %vm2315_vm0, %v2174_v11  ;;  %v187_v11 = vld [vmem:[%s5509_s0 + $0x580] sm:$0xff] }
 0x202   :  { %1559 = vperm.xlu2 %2611, %v493_v12   ;;  %v177_v12 = vld [vmem:[%s5509_s0 + $0x530] sm:$0xff] }
 0x203   :  { %1554 = vperm.xlu1 %2610, %v492_v13   ;;  %1549 = vperm.xlu0 %2609, %v491_v14   ;;  %v176_v13 = vld [vmem:[%s5509_s0 + $0x528] sm:$0xff] }
 0x204   :  { %v1395_v18 = vpop.permute.xlu2 %1394 }
 0x205   :  { %v2188_v19 = vmul.f32 %v1395_v18, %v172_v15  ;;  %v1345_v20 = vpop.permute.xlu1 %1344  ;;  %v1340_v21 = vpop.permute.xlu0 %1339 }
 0x206   :  { %v2178_v22 = vmul.f32 %v1345_v20, %v162_v16  ;;  %v2177_v23 = vmul.f32 %v1340_v21, %v161_v17  ;;  %v511_v20 = vld [vmem:[%s5508_s1 + $0x6a0] sm:$0xff]  ;;  %v510_v21 = vld [vmem:[%s5508_s1 + $0x698] sm:$0xff] }
 0x207   :  { %2477 = vst.msk [vmem:[%s5510_s2 + $0x508] sm:$0xff] %vm2315_vm0, %v2188_v19 }
 0x208   :  { %2467 = vst.msk [vmem:[%s5510_s2 + $0x4b8] sm:$0xff] %vm2315_vm0, %v2178_v22  ;;  %v509_v22 = vld [vmem:[%s5508_s1 + $0x690] sm:$0xff] }
 0x209   :  { %2466 = vst.msk [vmem:[%s5510_s2 + $0x4b0] sm:$0xff] %vm2315_vm0, %v2177_v23  ;;  %v190_v23 = vld [vmem:[%s5509_s0 + $0x598] sm:$0xff] }
 0x20a   :  { %1574 = vperm.xlu2 %2611, %v496_v24   ;;  %v180_v24 = vld [vmem:[%s5509_s0 + $0x548] sm:$0xff] }
 0x20b   :  { %1569 = vperm.xlu1 %2610, %v495_v25   ;;  %1564 = vperm.xlu0 %2609, %v494_v26   ;;  %v179_v25 = vld [vmem:[%s5509_s0 + $0x540] sm:$0xff] }
 0x20c   :  { %v1410_v30 = vpop.permute.xlu2 %1409 }
 0x20d   :  { %v2191_v31 = vmul.f32 %v1410_v30, %v175_v27  ;;  %v1360_v32 = vpop.permute.xlu1 %1359  ;;  %v1355_v33 = vpop.permute.xlu0 %1354 }
 0x20e   :  { %v2181_v34 = vmul.f32 %v1360_v32, %v165_v28  ;;  %v2180_v35 = vmul.f32 %v1355_v33, %v164_v29  ;;  %v514_v32 = vld [vmem:[%s5508_s1 + $0x6b8] sm:$0xff]  ;;  %v513_v33 = vld [vmem:[%s5508_s1 + $0x6b0] sm:$0xff] }
 0x20f   :  { %2480 = vst.msk [vmem:[%s5510_s2 + $0x520] sm:$0xff] %vm2315_vm0, %v2191_v31 }
 0x210   :  { %2470 = vst.msk [vmem:[%s5510_s2 + $0x4d0] sm:$0xff] %vm2315_vm0, %v2181_v34  ;;  %v512_v34 = vld [vmem:[%s5508_s1 + $0x6a8] sm:$0xff] }
 0x211   :  { %2469 = vst.msk [vmem:[%s5510_s2 + $0x4c8] sm:$0xff] %vm2315_vm0, %v2180_v35  ;;  %v193_v35 = vld [vmem:[%s5509_s0 + $0x5b0] sm:$0xff] }
 0x212   :  { %1589 = vperm.xlu2 %2611, %v499_v36   ;;  %v183_v36 = vld [vmem:[%s5509_s0 + $0x560] sm:$0xff] }
 0x213   :  { %1584 = vperm.xlu1 %2610, %v498_v37   ;;  %1579 = vperm.xlu0 %2609, %v497_v38   ;;  %v182_v37 = vld [vmem:[%s5509_s0 + $0x558] sm:$0xff] }
 0x214   :  { %v1425_v42 = vpop.permute.xlu2 %1424 }
 0x215   :  { %v2194_v43 = vmul.f32 %v1425_v42, %v178_v39  ;;  %v1375_v44 = vpop.permute.xlu1 %1374  ;;  %v1370_v45 = vpop.permute.xlu0 %1369 }
 0x216   :  { %v2184_v46 = vmul.f32 %v1375_v44, %v168_v40  ;;  %v2183_v47 = vmul.f32 %v1370_v45, %v167_v41  ;;  %v517_v44 = vld [vmem:[%s5508_s1 + $0x6d0] sm:$0xff]  ;;  %v516_v45 = vld [vmem:[%s5508_s1 + $0x6c8] sm:$0xff] }
 0x217   :  { %2483 = vst.msk [vmem:[%s5510_s2 + $0x538] sm:$0xff] %vm2315_vm0, %v2194_v43 }
 0x218   :  { %2473 = vst.msk [vmem:[%s5510_s2 + $0x4e8] sm:$0xff] %vm2315_vm0, %v2184_v46  ;;  %v515_v46 = vld [vmem:[%s5508_s1 + $0x6c0] sm:$0xff] }
 0x219   :  { %2472 = vst.msk [vmem:[%s5510_s2 + $0x4e0] sm:$0xff] %vm2315_vm0, %v2183_v47  ;;  %v196_v47 = vld [vmem:[%s5509_s0 + $0x5c8] sm:$0xff] }
 0x21a   :  { %1604 = vperm.xlu2 %2611, %v502_v48   ;;  %v186_v48 = vld [vmem:[%s5509_s0 + $0x578] sm:$0xff] }
 0x21b   :  { %1599 = vperm.xlu1 %2610, %v501_v49   ;;  %1594 = vperm.xlu0 %2609, %v500_v50   ;;  %v185_v49 = vld [vmem:[%s5509_s0 + $0x570] sm:$0xff] }
 0x21c   :  { %v1440_v54 = vpop.permute.xlu2 %1439 }
 0x21d   :  { %v2197_v55 = vmul.f32 %v1440_v54, %v181_v51  ;;  %v1390_v56 = vpop.permute.xlu1 %1389  ;;  %v1385_v57 = vpop.permute.xlu0 %1384 }
 0x21e   :  { %v2187_v58 = vmul.f32 %v1390_v56, %v171_v52  ;;  %v2186_v59 = vmul.f32 %v1385_v57, %v170_v53  ;;  %v520_v56 = vld [vmem:[%s5508_s1 + $0x6e8] sm:$0xff]  ;;  %v519_v57 = vld [vmem:[%s5508_s1 + $0x6e0] sm:$0xff] }
 0x21f   :  { %2486 = vst.msk [vmem:[%s5510_s2 + $0x550] sm:$0xff] %vm2315_vm0, %v2197_v55 }
 0x220   :  { %2476 = vst.msk [vmem:[%s5510_s2 + $0x500] sm:$0xff] %vm2315_vm0, %v2187_v58  ;;  %v518_v58 = vld [vmem:[%s5508_s1 + $0x6d8] sm:$0xff] }
 0x221   :  { %2475 = vst.msk [vmem:[%s5510_s2 + $0x4f8] sm:$0xff] %vm2315_vm0, %v2186_v59  ;;  %v199_v59 = vld [vmem:[%s5509_s0 + $0x5e0] sm:$0xff] }
 0x222   :  { %1619 = vperm.xlu2 %2611, %v505_v60   ;;  %v189_v60 = vld [vmem:[%s5509_s0 + $0x590] sm:$0xff] }
 0x223   :  { %1614 = vperm.xlu1 %2610, %v504_v61   ;;  %1609 = vperm.xlu0 %2609, %v503_v62   ;;  %v188_v61 = vld [vmem:[%s5509_s0 + $0x588] sm:$0xff] }
 0x224   :  { %v1455_v2 = vpop.permute.xlu2 %1454 }
 0x225   :  { %v2200_v3 = vmul.f32 %v1455_v2, %v184_v63  ;;  %v1405_v4 = vpop.permute.xlu1 %1404  ;;  %v1400_v5 = vpop.permute.xlu0 %1399 }
 0x226   :  { %v2190_v6 = vmul.f32 %v1405_v4, %v174_v0  ;;  %v2189_v7 = vmul.f32 %v1400_v5, %v173_v1  ;;  %v523_v4 = vld [vmem:[%s5508_s1 + $0x700] sm:$0xff]  ;;  %v522_v5 = vld [vmem:[%s5508_s1 + $0x6f8] sm:$0xff] }
 0x227   :  { %2489 = vst.msk [vmem:[%s5510_s2 + $0x568] sm:$0xff] %vm2315_vm0, %v2200_v3 }
 0x228   :  { %2479 = vst.msk [vmem:[%s5510_s2 + $0x518] sm:$0xff] %vm2315_vm0, %v2190_v6  ;;  %v521_v6 = vld [vmem:[%s5508_s1 + $0x6f0] sm:$0xff] }
 0x229   :  { %2478 = vst.msk [vmem:[%s5510_s2 + $0x510] sm:$0xff] %vm2315_vm0, %v2189_v7  ;;  %v202_v7 = vld [vmem:[%s5509_s0 + $0x5f8] sm:$0xff] }
 0x22a   :  { %1634 = vperm.xlu2 %2611, %v508_v8   ;;  %v192_v8 = vld [vmem:[%s5509_s0 + $0x5a8] sm:$0xff] }
 0x22b   :  { %1629 = vperm.xlu1 %2610, %v507_v9   ;;  %1624 = vperm.xlu0 %2609, %v506_v10   ;;  %v191_v9 = vld [vmem:[%s5509_s0 + $0x5a0] sm:$0xff] }
 0x22c   :  { %v1470_v14 = vpop.permute.xlu2 %1469 }
 0x22d   :  { %v2203_v15 = vmul.f32 %v1470_v14, %v187_v11  ;;  %v1420_v16 = vpop.permute.xlu1 %1419  ;;  %v1415_v17 = vpop.permute.xlu0 %1414 }
 0x22e   :  { %v2193_v18 = vmul.f32 %v1420_v16, %v177_v12  ;;  %v2192_v19 = vmul.f32 %v1415_v17, %v176_v13  ;;  %v526_v16 = vld [vmem:[%s5508_s1 + $0x718] sm:$0xff]  ;;  %v525_v17 = vld [vmem:[%s5508_s1 + $0x710] sm:$0xff] }
 0x22f   :  { %2492 = vst.msk [vmem:[%s5510_s2 + $0x580] sm:$0xff] %vm2315_vm0, %v2203_v15 }
 0x230   :  { %2482 = vst.msk [vmem:[%s5510_s2 + $0x530] sm:$0xff] %vm2315_vm0, %v2193_v18  ;;  %v524_v18 = vld [vmem:[%s5508_s1 + $0x708] sm:$0xff] }
 0x231   :  { %2481 = vst.msk [vmem:[%s5510_s2 + $0x528] sm:$0xff] %vm2315_vm0, %v2192_v19  ;;  %v205_v19 = vld [vmem:[%s5509_s0 + $0x610] sm:$0xff] }
 0x232   :  { %1649 = vperm.xlu2 %2611, %v511_v20   ;;  %v195_v20 = vld [vmem:[%s5509_s0 + $0x5c0] sm:$0xff] }
 0x233   :  { %1644 = vperm.xlu1 %2610, %v510_v21   ;;  %1639 = vperm.xlu0 %2609, %v509_v22   ;;  %v194_v21 = vld [vmem:[%s5509_s0 + $0x5b8] sm:$0xff] }
 0x234   :  { %v1485_v26 = vpop.permute.xlu2 %1484 }
 0x235   :  { %v2206_v27 = vmul.f32 %v1485_v26, %v190_v23  ;;  %v1435_v28 = vpop.permute.xlu1 %1434  ;;  %v1430_v29 = vpop.permute.xlu0 %1429 }
 0x236   :  { %v2196_v30 = vmul.f32 %v1435_v28, %v180_v24  ;;  %v2195_v31 = vmul.f32 %v1430_v29, %v179_v25  ;;  %v529_v28 = vld [vmem:[%s5508_s1 + $0x730] sm:$0xff]  ;;  %v528_v29 = vld [vmem:[%s5508_s1 + $0x728] sm:$0xff] }
 0x237   :  { %2495 = vst.msk [vmem:[%s5510_s2 + $0x598] sm:$0xff] %vm2315_vm0, %v2206_v27 }
 0x238   :  { %2485 = vst.msk [vmem:[%s5510_s2 + $0x548] sm:$0xff] %vm2315_vm0, %v2196_v30  ;;  %v527_v30 = vld [vmem:[%s5508_s1 + $0x720] sm:$0xff] }
 0x239   :  { %2484 = vst.msk [vmem:[%s5510_s2 + $0x540] sm:$0xff] %vm2315_vm0, %v2195_v31  ;;  %v208_v31 = vld [vmem:[%s5509_s0 + $0x628] sm:$0xff] }
 0x23a   :  { %1664 = vperm.xlu2 %2611, %v514_v32   ;;  %v198_v32 = vld [vmem:[%s5509_s0 + $0x5d8] sm:$0xff] }
 0x23b   :  { %1659 = vperm.xlu1 %2610, %v513_v33   ;;  %1654 = vperm.xlu0 %2609, %v512_v34   ;;  %v197_v33 = vld [vmem:[%s5509_s0 + $0x5d0] sm:$0xff] }
 0x23c   :  { %v1500_v38 = vpop.permute.xlu2 %1499 }
 0x23d   :  { %v2209_v39 = vmul.f32 %v1500_v38, %v193_v35  ;;  %v1450_v40 = vpop.permute.xlu1 %1449  ;;  %v1445_v41 = vpop.permute.xlu0 %1444 }
 0x23e   :  { %v2199_v42 = vmul.f32 %v1450_v40, %v183_v36  ;;  %v2198_v43 = vmul.f32 %v1445_v41, %v182_v37  ;;  %v532_v40 = vld [vmem:[%s5508_s1 + $0x748] sm:$0xff]  ;;  %v531_v41 = vld [vmem:[%s5508_s1 + $0x740] sm:$0xff] }
 0x23f   :  { %2498 = vst.msk [vmem:[%s5510_s2 + $0x5b0] sm:$0xff] %vm2315_vm0, %v2209_v39 }
 0x240   :  { %2488 = vst.msk [vmem:[%s5510_s2 + $0x560] sm:$0xff] %vm2315_vm0, %v2199_v42  ;;  %v530_v42 = vld [vmem:[%s5508_s1 + $0x738] sm:$0xff] }
 0x241   :  { %2487 = vst.msk [vmem:[%s5510_s2 + $0x558] sm:$0xff] %vm2315_vm0, %v2198_v43  ;;  %v211_v43 = vld [vmem:[%s5509_s0 + $0x640] sm:$0xff] }
 0x242   :  { %1679 = vperm.xlu2 %2611, %v517_v44   ;;  %v201_v44 = vld [vmem:[%s5509_s0 + $0x5f0] sm:$0xff] }
 0x243   :  { %1674 = vperm.xlu1 %2610, %v516_v45   ;;  %1669 = vperm.xlu0 %2609, %v515_v46   ;;  %v200_v45 = vld [vmem:[%s5509_s0 + $0x5e8] sm:$0xff] }
 0x244   :  { %v1515_v50 = vpop.permute.xlu2 %1514 }
 0x245   :  { %v2212_v51 = vmul.f32 %v1515_v50, %v196_v47  ;;  %v1465_v52 = vpop.permute.xlu1 %1464  ;;  %v1460_v53 = vpop.permute.xlu0 %1459 }
 0x246   :  { %v2202_v54 = vmul.f32 %v1465_v52, %v186_v48  ;;  %v2201_v55 = vmul.f32 %v1460_v53, %v185_v49  ;;  %v535_v52 = vld [vmem:[%s5508_s1 + $0x760] sm:$0xff]  ;;  %v534_v53 = vld [vmem:[%s5508_s1 + $0x758] sm:$0xff] }
 0x247   :  { %2501 = vst.msk [vmem:[%s5510_s2 + $0x5c8] sm:$0xff] %vm2315_vm0, %v2212_v51 }
 0x248   :  { %2491 = vst.msk [vmem:[%s5510_s2 + $0x578] sm:$0xff] %vm2315_vm0, %v2202_v54  ;;  %v533_v54 = vld [vmem:[%s5508_s1 + $0x750] sm:$0xff] }
 0x249   :  { %2490 = vst.msk [vmem:[%s5510_s2 + $0x570] sm:$0xff] %vm2315_vm0, %v2201_v55  ;;  %v214_v55 = vld [vmem:[%s5509_s0 + $0x658] sm:$0xff] }
 0x24a   :  { %1694 = vperm.xlu2 %2611, %v520_v56   ;;  %v204_v56 = vld [vmem:[%s5509_s0 + $0x608] sm:$0xff] }
 0x24b   :  { %1689 = vperm.xlu1 %2610, %v519_v57   ;;  %1684 = vperm.xlu0 %2609, %v518_v58   ;;  %v203_v57 = vld [vmem:[%s5509_s0 + $0x600] sm:$0xff] }
 0x24c   :  { %v1530_v62 = vpop.permute.xlu2 %1529 }
 0x24d   :  { %v2215_v63 = vmul.f32 %v1530_v62, %v199_v59  ;;  %v1480_v0 = vpop.permute.xlu1 %1479  ;;  %v1475_v1 = vpop.permute.xlu0 %1474 }
 0x24e   :  { %v2205_v2 = vmul.f32 %v1480_v0, %v189_v60  ;;  %v2204_v3 = vmul.f32 %v1475_v1, %v188_v61  ;;  %v538_v0 = vld [vmem:[%s5508_s1 + $0x778] sm:$0xff]  ;;  %v537_v1 = vld [vmem:[%s5508_s1 + $0x770] sm:$0xff] }
 0x24f   :  { %2504 = vst.msk [vmem:[%s5510_s2 + $0x5e0] sm:$0xff] %vm2315_vm0, %v2215_v63 }
 0x250   :  { %2494 = vst.msk [vmem:[%s5510_s2 + $0x590] sm:$0xff] %vm2315_vm0, %v2205_v2  ;;  %v536_v2 = vld [vmem:[%s5508_s1 + $0x768] sm:$0xff] }
 0x251   :  { %2493 = vst.msk [vmem:[%s5510_s2 + $0x588] sm:$0xff] %vm2315_vm0, %v2204_v3  ;;  %v217_v3 = vld [vmem:[%s5509_s0 + $0x670] sm:$0xff] }
 0x252   :  { %1709 = vperm.xlu2 %2611, %v523_v4   ;;  %v207_v4 = vld [vmem:[%s5509_s0 + $0x620] sm:$0xff] }
 0x253   :  { %1704 = vperm.xlu1 %2610, %v522_v5   ;;  %1699 = vperm.xlu0 %2609, %v521_v6   ;;  %v206_v5 = vld [vmem:[%s5509_s0 + $0x618] sm:$0xff] }
 0x254   :  { %v1545_v10 = vpop.permute.xlu2 %1544 }
 0x255   :  { %v2218_v11 = vmul.f32 %v1545_v10, %v202_v7  ;;  %v1495_v12 = vpop.permute.xlu1 %1494  ;;  %v1490_v13 = vpop.permute.xlu0 %1489 }
 0x256   :  { %v2208_v14 = vmul.f32 %v1495_v12, %v192_v8  ;;  %v2207_v15 = vmul.f32 %v1490_v13, %v191_v9  ;;  %v541_v12 = vld [vmem:[%s5508_s1 + $0x790] sm:$0xff]  ;;  %v540_v13 = vld [vmem:[%s5508_s1 + $0x788] sm:$0xff] }
 0x257   :  { %2507 = vst.msk [vmem:[%s5510_s2 + $0x5f8] sm:$0xff] %vm2315_vm0, %v2218_v11 }
 0x258   :  { %2497 = vst.msk [vmem:[%s5510_s2 + $0x5a8] sm:$0xff] %vm2315_vm0, %v2208_v14  ;;  %v539_v14 = vld [vmem:[%s5508_s1 + $0x780] sm:$0xff] }
 0x259   :  { %2496 = vst.msk [vmem:[%s5510_s2 + $0x5a0] sm:$0xff] %vm2315_vm0, %v2207_v15  ;;  %v220_v15 = vld [vmem:[%s5509_s0 + $0x688] sm:$0xff] }
 0x25a   :  { %1724 = vperm.xlu2 %2611, %v526_v16   ;;  %v210_v16 = vld [vmem:[%s5509_s0 + $0x638] sm:$0xff] }
 0x25b   :  { %1719 = vperm.xlu1 %2610, %v525_v17   ;;  %1714 = vperm.xlu0 %2609, %v524_v18   ;;  %v209_v17 = vld [vmem:[%s5509_s0 + $0x630] sm:$0xff] }
 0x25c   :  { %v1560_v22 = vpop.permute.xlu2 %1559 }
 0x25d   :  { %v2221_v23 = vmul.f32 %v1560_v22, %v205_v19  ;;  %v1510_v24 = vpop.permute.xlu1 %1509  ;;  %v1505_v25 = vpop.permute.xlu0 %1504 }
 0x25e   :  { %v2211_v26 = vmul.f32 %v1510_v24, %v195_v20  ;;  %v2210_v27 = vmul.f32 %v1505_v25, %v194_v21  ;;  %v544_v24 = vld [vmem:[%s5508_s1 + $0x7a8] sm:$0xff]  ;;  %v543_v25 = vld [vmem:[%s5508_s1 + $0x7a0] sm:$0xff] }
 0x25f   :  { %2510 = vst.msk [vmem:[%s5510_s2 + $0x610] sm:$0xff] %vm2315_vm0, %v2221_v23 }
 0x260   :  { %2500 = vst.msk [vmem:[%s5510_s2 + $0x5c0] sm:$0xff] %vm2315_vm0, %v2211_v26  ;;  %v542_v26 = vld [vmem:[%s5508_s1 + $0x798] sm:$0xff] }
 0x261   :  { %2499 = vst.msk [vmem:[%s5510_s2 + $0x5b8] sm:$0xff] %vm2315_vm0, %v2210_v27  ;;  %v223_v27 = vld [vmem:[%s5509_s0 + $0x6a0] sm:$0xff] }
 0x262   :  { %1739 = vperm.xlu2 %2611, %v529_v28   ;;  %v213_v28 = vld [vmem:[%s5509_s0 + $0x650] sm:$0xff] }
 0x263   :  { %1734 = vperm.xlu1 %2610, %v528_v29   ;;  %1729 = vperm.xlu0 %2609, %v527_v30   ;;  %v212_v29 = vld [vmem:[%s5509_s0 + $0x648] sm:$0xff] }
 0x264   :  { %v1575_v34 = vpop.permute.xlu2 %1574 }
 0x265   :  { %v2224_v35 = vmul.f32 %v1575_v34, %v208_v31  ;;  %v1525_v36 = vpop.permute.xlu1 %1524  ;;  %v1520_v37 = vpop.permute.xlu0 %1519 }
 0x266   :  { %v2214_v38 = vmul.f32 %v1525_v36, %v198_v32  ;;  %v2213_v39 = vmul.f32 %v1520_v37, %v197_v33  ;;  %v547_v36 = vld [vmem:[%s5508_s1 + $0x7c0] sm:$0xff]  ;;  %v546_v37 = vld [vmem:[%s5508_s1 + $0x7b8] sm:$0xff] }
 0x267   :  { %2513 = vst.msk [vmem:[%s5510_s2 + $0x628] sm:$0xff] %vm2315_vm0, %v2224_v35 }
 0x268   :  { %2503 = vst.msk [vmem:[%s5510_s2 + $0x5d8] sm:$0xff] %vm2315_vm0, %v2214_v38  ;;  %v545_v38 = vld [vmem:[%s5508_s1 + $0x7b0] sm:$0xff] }
 0x269   :  { %2502 = vst.msk [vmem:[%s5510_s2 + $0x5d0] sm:$0xff] %vm2315_vm0, %v2213_v39  ;;  %v226_v39 = vld [vmem:[%s5509_s0 + $0x6b8] sm:$0xff] }
 0x26a   :  { %1754 = vperm.xlu2 %2611, %v532_v40   ;;  %v216_v40 = vld [vmem:[%s5509_s0 + $0x668] sm:$0xff] }
 0x26b   :  { %1749 = vperm.xlu1 %2610, %v531_v41   ;;  %1744 = vperm.xlu0 %2609, %v530_v42   ;;  %v215_v41 = vld [vmem:[%s5509_s0 + $0x660] sm:$0xff] }
 0x26c   :  { %v1590_v46 = vpop.permute.xlu2 %1589 }
 0x26d   :  { %v2227_v47 = vmul.f32 %v1590_v46, %v211_v43  ;;  %v1540_v48 = vpop.permute.xlu1 %1539  ;;  %v1535_v49 = vpop.permute.xlu0 %1534 }
 0x26e   :  { %v2217_v50 = vmul.f32 %v1540_v48, %v201_v44  ;;  %v2216_v51 = vmul.f32 %v1535_v49, %v200_v45  ;;  %v550_v48 = vld [vmem:[%s5508_s1 + $0x7d8] sm:$0xff]  ;;  %v549_v49 = vld [vmem:[%s5508_s1 + $0x7d0] sm:$0xff] }
 0x26f   :  { %2516 = vst.msk [vmem:[%s5510_s2 + $0x640] sm:$0xff] %vm2315_vm0, %v2227_v47 }
 0x270   :  { %2506 = vst.msk [vmem:[%s5510_s2 + $0x5f0] sm:$0xff] %vm2315_vm0, %v2217_v50  ;;  %v548_v50 = vld [vmem:[%s5508_s1 + $0x7c8] sm:$0xff] }
 0x271   :  { %2505 = vst.msk [vmem:[%s5510_s2 + $0x5e8] sm:$0xff] %vm2315_vm0, %v2216_v51  ;;  %v229_v51 = vld [vmem:[%s5509_s0 + $0x6d0] sm:$0xff] }
 0x272   :  { %1769 = vperm.xlu2 %2611, %v535_v52   ;;  %v219_v52 = vld [vmem:[%s5509_s0 + $0x680] sm:$0xff] }
 0x273   :  { %1764 = vperm.xlu1 %2610, %v534_v53   ;;  %1759 = vperm.xlu0 %2609, %v533_v54   ;;  %v218_v53 = vld [vmem:[%s5509_s0 + $0x678] sm:$0xff] }
 0x274   :  { %v1605_v58 = vpop.permute.xlu2 %1604 }
 0x275   :  { %v2230_v59 = vmul.f32 %v1605_v58, %v214_v55  ;;  %v1555_v60 = vpop.permute.xlu1 %1554  ;;  %v1550_v61 = vpop.permute.xlu0 %1549 }
 0x276   :  { %v2220_v62 = vmul.f32 %v1555_v60, %v204_v56  ;;  %v2219_v63 = vmul.f32 %v1550_v61, %v203_v57  ;;  %v553_v60 = vld [vmem:[%s5508_s1 + $0x7f0] sm:$0xff]  ;;  %v552_v61 = vld [vmem:[%s5508_s1 + $0x7e8] sm:$0xff] }
 0x277   :  { %2519 = vst.msk [vmem:[%s5510_s2 + $0x658] sm:$0xff] %vm2315_vm0, %v2230_v59 }
 0x278   :  { %2509 = vst.msk [vmem:[%s5510_s2 + $0x608] sm:$0xff] %vm2315_vm0, %v2220_v62  ;;  %v551_v62 = vld [vmem:[%s5508_s1 + $0x7e0] sm:$0xff] }
 0x279   :  { %2508 = vst.msk [vmem:[%s5510_s2 + $0x600] sm:$0xff] %vm2315_vm0, %v2219_v63  ;;  %v232_v63 = vld [vmem:[%s5509_s0 + $0x6e8] sm:$0xff] }
 0x27a   :  { %1784 = vperm.xlu2 %2611, %v538_v0   ;;  %v222_v0 = vld [vmem:[%s5509_s0 + $0x698] sm:$0xff] }
 0x27b   :  { %1779 = vperm.xlu1 %2610, %v537_v1   ;;  %1774 = vperm.xlu0 %2609, %v536_v2   ;;  %v221_v1 = vld [vmem:[%s5509_s0 + $0x690] sm:$0xff] }
 0x27c   :  { %v1620_v6 = vpop.permute.xlu2 %1619 }
 0x27d   :  { %v2233_v7 = vmul.f32 %v1620_v6, %v217_v3  ;;  %v1570_v8 = vpop.permute.xlu1 %1569  ;;  %v1565_v9 = vpop.permute.xlu0 %1564 }
 0x27e   :  { %v2223_v10 = vmul.f32 %v1570_v8, %v207_v4  ;;  %v2222_v11 = vmul.f32 %v1565_v9, %v206_v5  ;;  %v556_v8 = vld [vmem:[%s5508_s1 + $0x808] sm:$0xff]  ;;  %v555_v9 = vld [vmem:[%s5508_s1 + $0x800] sm:$0xff] }
 0x27f   :  { %2522 = vst.msk [vmem:[%s5510_s2 + $0x670] sm:$0xff] %vm2315_vm0, %v2233_v7 }
 0x280   :  { %2512 = vst.msk [vmem:[%s5510_s2 + $0x620] sm:$0xff] %vm2315_vm0, %v2223_v10  ;;  %v554_v10 = vld [vmem:[%s5508_s1 + $0x7f8] sm:$0xff] }
 0x281   :  { %2511 = vst.msk [vmem:[%s5510_s2 + $0x618] sm:$0xff] %vm2315_vm0, %v2222_v11  ;;  %v235_v11 = vld [vmem:[%s5509_s0 + $0x700] sm:$0xff] }
 0x282   :  { %1799 = vperm.xlu2 %2611, %v541_v12   ;;  %v225_v12 = vld [vmem:[%s5509_s0 + $0x6b0] sm:$0xff] }
 0x283   :  { %1794 = vperm.xlu1 %2610, %v540_v13   ;;  %1789 = vperm.xlu0 %2609, %v539_v14   ;;  %v224_v13 = vld [vmem:[%s5509_s0 + $0x6a8] sm:$0xff] }
 0x284   :  { %v1635_v18 = vpop.permute.xlu2 %1634 }
 0x285   :  { %v2236_v19 = vmul.f32 %v1635_v18, %v220_v15  ;;  %v1585_v20 = vpop.permute.xlu1 %1584  ;;  %v1580_v21 = vpop.permute.xlu0 %1579 }
 0x286   :  { %v2226_v22 = vmul.f32 %v1585_v20, %v210_v16  ;;  %v2225_v23 = vmul.f32 %v1580_v21, %v209_v17  ;;  %v559_v20 = vld [vmem:[%s5508_s1 + $0x820] sm:$0xff]  ;;  %v558_v21 = vld [vmem:[%s5508_s1 + $0x818] sm:$0xff] }
 0x287   :  { %2525 = vst.msk [vmem:[%s5510_s2 + $0x688] sm:$0xff] %vm2315_vm0, %v2236_v19 }
 0x288   :  { %2515 = vst.msk [vmem:[%s5510_s2 + $0x638] sm:$0xff] %vm2315_vm0, %v2226_v22  ;;  %v557_v22 = vld [vmem:[%s5508_s1 + $0x810] sm:$0xff] }
 0x289   :  { %2514 = vst.msk [vmem:[%s5510_s2 + $0x630] sm:$0xff] %vm2315_vm0, %v2225_v23  ;;  %v238_v23 = vld [vmem:[%s5509_s0 + $0x718] sm:$0xff] }
 0x28a   :  { %1814 = vperm.xlu2 %2611, %v544_v24   ;;  %v228_v24 = vld [vmem:[%s5509_s0 + $0x6c8] sm:$0xff] }
 0x28b   :  { %1809 = vperm.xlu1 %2610, %v543_v25   ;;  %1804 = vperm.xlu0 %2609, %v542_v26   ;;  %v227_v25 = vld [vmem:[%s5509_s0 + $0x6c0] sm:$0xff] }
 0x28c   :  { %v1650_v30 = vpop.permute.xlu2 %1649 }
 0x28d   :  { %v2239_v31 = vmul.f32 %v1650_v30, %v223_v27  ;;  %v1600_v32 = vpop.permute.xlu1 %1599  ;;  %v1595_v33 = vpop.permute.xlu0 %1594 }
 0x28e   :  { %v2229_v34 = vmul.f32 %v1600_v32, %v213_v28  ;;  %v2228_v35 = vmul.f32 %v1595_v33, %v212_v29  ;;  %v562_v32 = vld [vmem:[%s5508_s1 + $0x838] sm:$0xff]  ;;  %v561_v33 = vld [vmem:[%s5508_s1 + $0x830] sm:$0xff] }
 0x28f   :  { %2528 = vst.msk [vmem:[%s5510_s2 + $0x6a0] sm:$0xff] %vm2315_vm0, %v2239_v31 }
 0x290   :  { %2518 = vst.msk [vmem:[%s5510_s2 + $0x650] sm:$0xff] %vm2315_vm0, %v2229_v34  ;;  %v560_v34 = vld [vmem:[%s5508_s1 + $0x828] sm:$0xff] }
 0x291   :  { %2517 = vst.msk [vmem:[%s5510_s2 + $0x648] sm:$0xff] %vm2315_vm0, %v2228_v35  ;;  %v241_v35 = vld [vmem:[%s5509_s0 + $0x730] sm:$0xff] }
 0x292   :  { %1829 = vperm.xlu2 %2611, %v547_v36   ;;  %v231_v36 = vld [vmem:[%s5509_s0 + $0x6e0] sm:$0xff] }
 0x293   :  { %1824 = vperm.xlu1 %2610, %v546_v37   ;;  %1819 = vperm.xlu0 %2609, %v545_v38   ;;  %v230_v37 = vld [vmem:[%s5509_s0 + $0x6d8] sm:$0xff] }
 0x294   :  { %v1665_v42 = vpop.permute.xlu2 %1664 }
 0x295   :  { %v2242_v43 = vmul.f32 %v1665_v42, %v226_v39  ;;  %v1615_v44 = vpop.permute.xlu1 %1614  ;;  %v1610_v45 = vpop.permute.xlu0 %1609 }
 0x296   :  { %v2232_v46 = vmul.f32 %v1615_v44, %v216_v40  ;;  %v2231_v47 = vmul.f32 %v1610_v45, %v215_v41  ;;  %v565_v44 = vld [vmem:[%s5508_s1 + $0x850] sm:$0xff]  ;;  %v564_v45 = vld [vmem:[%s5508_s1 + $0x848] sm:$0xff] }
 0x297   :  { %2531 = vst.msk [vmem:[%s5510_s2 + $0x6b8] sm:$0xff] %vm2315_vm0, %v2242_v43 }
 0x298   :  { %2521 = vst.msk [vmem:[%s5510_s2 + $0x668] sm:$0xff] %vm2315_vm0, %v2232_v46  ;;  %v563_v46 = vld [vmem:[%s5508_s1 + $0x840] sm:$0xff] }
 0x299   :  { %2520 = vst.msk [vmem:[%s5510_s2 + $0x660] sm:$0xff] %vm2315_vm0, %v2231_v47  ;;  %v244_v47 = vld [vmem:[%s5509_s0 + $0x748] sm:$0xff] }
 0x29a   :  { %1844 = vperm.xlu2 %2611, %v550_v48   ;;  %v234_v48 = vld [vmem:[%s5509_s0 + $0x6f8] sm:$0xff] }
 0x29b   :  { %1839 = vperm.xlu1 %2610, %v549_v49   ;;  %1834 = vperm.xlu0 %2609, %v548_v50   ;;  %v233_v49 = vld [vmem:[%s5509_s0 + $0x6f0] sm:$0xff] }
 0x29c   :  { %v1680_v54 = vpop.permute.xlu2 %1679 }
 0x29d   :  { %v2245_v55 = vmul.f32 %v1680_v54, %v229_v51  ;;  %v1630_v56 = vpop.permute.xlu1 %1629  ;;  %v1625_v57 = vpop.permute.xlu0 %1624 }
 0x29e   :  { %v2235_v58 = vmul.f32 %v1630_v56, %v219_v52  ;;  %v2234_v59 = vmul.f32 %v1625_v57, %v218_v53  ;;  %v568_v56 = vld [vmem:[%s5508_s1 + $0x868] sm:$0xff]  ;;  %v567_v57 = vld [vmem:[%s5508_s1 + $0x860] sm:$0xff] }
 0x29f   :  { %2534 = vst.msk [vmem:[%s5510_s2 + $0x6d0] sm:$0xff] %vm2315_vm0, %v2245_v55 }
 0x2a0   :  { %2524 = vst.msk [vmem:[%s5510_s2 + $0x680] sm:$0xff] %vm2315_vm0, %v2235_v58  ;;  %v566_v58 = vld [vmem:[%s5508_s1 + $0x858] sm:$0xff] }
 0x2a1   :  { %2523 = vst.msk [vmem:[%s5510_s2 + $0x678] sm:$0xff] %vm2315_vm0, %v2234_v59  ;;  %v247_v59 = vld [vmem:[%s5509_s0 + $0x760] sm:$0xff] }
 0x2a2   :  { %1859 = vperm.xlu2 %2611, %v553_v60   ;;  %v237_v60 = vld [vmem:[%s5509_s0 + $0x710] sm:$0xff] }
 0x2a3   :  { %1854 = vperm.xlu1 %2610, %v552_v61   ;;  %1849 = vperm.xlu0 %2609, %v551_v62   ;;  %v236_v61 = vld [vmem:[%s5509_s0 + $0x708] sm:$0xff] }
 0x2a4   :  { %v1695_v2 = vpop.permute.xlu2 %1694 }
 0x2a5   :  { %v2248_v3 = vmul.f32 %v1695_v2, %v232_v63  ;;  %v1645_v4 = vpop.permute.xlu1 %1644  ;;  %v1640_v5 = vpop.permute.xlu0 %1639 }
 0x2a6   :  { %v2238_v6 = vmul.f32 %v1645_v4, %v222_v0  ;;  %v2237_v7 = vmul.f32 %v1640_v5, %v221_v1  ;;  %v571_v4 = vld [vmem:[%s5508_s1 + $0x880] sm:$0xff]  ;;  %v570_v5 = vld [vmem:[%s5508_s1 + $0x878] sm:$0xff] }
 0x2a7   :  { %2537 = vst.msk [vmem:[%s5510_s2 + $0x6e8] sm:$0xff] %vm2315_vm0, %v2248_v3 }
 0x2a8   :  { %2527 = vst.msk [vmem:[%s5510_s2 + $0x698] sm:$0xff] %vm2315_vm0, %v2238_v6  ;;  %v569_v6 = vld [vmem:[%s5508_s1 + $0x870] sm:$0xff] }
 0x2a9   :  { %2526 = vst.msk [vmem:[%s5510_s2 + $0x690] sm:$0xff] %vm2315_vm0, %v2237_v7  ;;  %v250_v7 = vld [vmem:[%s5509_s0 + $0x778] sm:$0xff] }
 0x2aa   :  { %1874 = vperm.xlu2 %2611, %v556_v8   ;;  %v240_v8 = vld [vmem:[%s5509_s0 + $0x728] sm:$0xff] }
 0x2ab   :  { %1869 = vperm.xlu1 %2610, %v555_v9   ;;  %1864 = vperm.xlu0 %2609, %v554_v10   ;;  %v239_v9 = vld [vmem:[%s5509_s0 + $0x720] sm:$0xff] }
 0x2ac   :  { %v1710_v14 = vpop.permute.xlu2 %1709 }
 0x2ad   :  { %v2251_v15 = vmul.f32 %v1710_v14, %v235_v11  ;;  %v1660_v16 = vpop.permute.xlu1 %1659  ;;  %v1655_v17 = vpop.permute.xlu0 %1654 }
 0x2ae   :  { %v2241_v18 = vmul.f32 %v1660_v16, %v225_v12  ;;  %v2240_v19 = vmul.f32 %v1655_v17, %v224_v13  ;;  %v574_v16 = vld [vmem:[%s5508_s1 + $0x898] sm:$0xff]  ;;  %v573_v17 = vld [vmem:[%s5508_s1 + $0x890] sm:$0xff] }
 0x2af   :  { %2540 = vst.msk [vmem:[%s5510_s2 + $0x700] sm:$0xff] %vm2315_vm0, %v2251_v15 }
 0x2b0   :  { %2530 = vst.msk [vmem:[%s5510_s2 + $0x6b0] sm:$0xff] %vm2315_vm0, %v2241_v18  ;;  %v572_v18 = vld [vmem:[%s5508_s1 + $0x888] sm:$0xff] }
 0x2b1   :  { %2529 = vst.msk [vmem:[%s5510_s2 + $0x6a8] sm:$0xff] %vm2315_vm0, %v2240_v19  ;;  %v253_v19 = vld [vmem:[%s5509_s0 + $0x790] sm:$0xff] }
 0x2b2   :  { %1889 = vperm.xlu2 %2611, %v559_v20   ;;  %v243_v20 = vld [vmem:[%s5509_s0 + $0x740] sm:$0xff] }
 0x2b3   :  { %1884 = vperm.xlu1 %2610, %v558_v21   ;;  %1879 = vperm.xlu0 %2609, %v557_v22   ;;  %v242_v21 = vld [vmem:[%s5509_s0 + $0x738] sm:$0xff] }
 0x2b4   :  { %v1725_v26 = vpop.permute.xlu2 %1724 }
 0x2b5   :  { %v2254_v27 = vmul.f32 %v1725_v26, %v238_v23  ;;  %v1675_v28 = vpop.permute.xlu1 %1674  ;;  %v1670_v29 = vpop.permute.xlu0 %1669 }
 0x2b6   :  { %v2244_v30 = vmul.f32 %v1675_v28, %v228_v24  ;;  %v2243_v31 = vmul.f32 %v1670_v29, %v227_v25  ;;  %v577_v28 = vld [vmem:[%s5508_s1 + $0x8b0] sm:$0xff]  ;;  %v576_v29 = vld [vmem:[%s5508_s1 + $0x8a8] sm:$0xff] }
 0x2b7   :  { %2543 = vst.msk [vmem:[%s5510_s2 + $0x718] sm:$0xff] %vm2315_vm0, %v2254_v27 }
 0x2b8   :  { %2533 = vst.msk [vmem:[%s5510_s2 + $0x6c8] sm:$0xff] %vm2315_vm0, %v2244_v30  ;;  %v575_v30 = vld [vmem:[%s5508_s1 + $0x8a0] sm:$0xff] }
 0x2b9   :  { %2532 = vst.msk [vmem:[%s5510_s2 + $0x6c0] sm:$0xff] %vm2315_vm0, %v2243_v31  ;;  %v256_v31 = vld [vmem:[%s5509_s0 + $0x7a8] sm:$0xff] }
 0x2ba   :  { %1904 = vperm.xlu2 %2611, %v562_v32   ;;  %v246_v32 = vld [vmem:[%s5509_s0 + $0x758] sm:$0xff] }
 0x2bb   :  { %1899 = vperm.xlu1 %2610, %v561_v33   ;;  %1894 = vperm.xlu0 %2609, %v560_v34   ;;  %v245_v33 = vld [vmem:[%s5509_s0 + $0x750] sm:$0xff] }
 0x2bc   :  { %v1740_v38 = vpop.permute.xlu2 %1739 }
 0x2bd   :  { %v2257_v39 = vmul.f32 %v1740_v38, %v241_v35  ;;  %v1690_v40 = vpop.permute.xlu1 %1689  ;;  %v1685_v41 = vpop.permute.xlu0 %1684 }
 0x2be   :  { %v2247_v42 = vmul.f32 %v1690_v40, %v231_v36  ;;  %v2246_v43 = vmul.f32 %v1685_v41, %v230_v37  ;;  %v580_v40 = vld [vmem:[%s5508_s1 + $0x8c8] sm:$0xff]  ;;  %v579_v41 = vld [vmem:[%s5508_s1 + $0x8c0] sm:$0xff] }
 0x2bf   :  { %2546 = vst.msk [vmem:[%s5510_s2 + $0x730] sm:$0xff] %vm2315_vm0, %v2257_v39 }
 0x2c0   :  { %2536 = vst.msk [vmem:[%s5510_s2 + $0x6e0] sm:$0xff] %vm2315_vm0, %v2247_v42  ;;  %v578_v42 = vld [vmem:[%s5508_s1 + $0x8b8] sm:$0xff] }
 0x2c1   :  { %2535 = vst.msk [vmem:[%s5510_s2 + $0x6d8] sm:$0xff] %vm2315_vm0, %v2246_v43  ;;  %v259_v43 = vld [vmem:[%s5509_s0 + $0x7c0] sm:$0xff] }
 0x2c2   :  { %1919 = vperm.xlu2 %2611, %v565_v44   ;;  %v249_v44 = vld [vmem:[%s5509_s0 + $0x770] sm:$0xff] }
 0x2c3   :  { %1914 = vperm.xlu1 %2610, %v564_v45   ;;  %1909 = vperm.xlu0 %2609, %v563_v46   ;;  %v248_v45 = vld [vmem:[%s5509_s0 + $0x768] sm:$0xff] }
 0x2c4   :  { %v1755_v50 = vpop.permute.xlu2 %1754 }
 0x2c5   :  { %v2260_v51 = vmul.f32 %v1755_v50, %v244_v47  ;;  %v1705_v52 = vpop.permute.xlu1 %1704  ;;  %v1700_v53 = vpop.permute.xlu0 %1699 }
 0x2c6   :  { %v2250_v54 = vmul.f32 %v1705_v52, %v234_v48  ;;  %v2249_v55 = vmul.f32 %v1700_v53, %v233_v49  ;;  %v583_v52 = vld [vmem:[%s5508_s1 + $0x8e0] sm:$0xff]  ;;  %v582_v53 = vld [vmem:[%s5508_s1 + $0x8d8] sm:$0xff] }
 0x2c7   :  { %2549 = vst.msk [vmem:[%s5510_s2 + $0x748] sm:$0xff] %vm2315_vm0, %v2260_v51 }
 0x2c8   :  { %2539 = vst.msk [vmem:[%s5510_s2 + $0x6f8] sm:$0xff] %vm2315_vm0, %v2250_v54  ;;  %v581_v54 = vld [vmem:[%s5508_s1 + $0x8d0] sm:$0xff] }
 0x2c9   :  { %2538 = vst.msk [vmem:[%s5510_s2 + $0x6f0] sm:$0xff] %vm2315_vm0, %v2249_v55  ;;  %v262_v55 = vld [vmem:[%s5509_s0 + $0x7d8] sm:$0xff] }
 0x2ca   :  { %1934 = vperm.xlu2 %2611, %v568_v56   ;;  %v252_v56 = vld [vmem:[%s5509_s0 + $0x788] sm:$0xff] }
 0x2cb   :  { %1929 = vperm.xlu1 %2610, %v567_v57   ;;  %1924 = vperm.xlu0 %2609, %v566_v58   ;;  %v251_v57 = vld [vmem:[%s5509_s0 + $0x780] sm:$0xff] }
 0x2cc   :  { %v1770_v62 = vpop.permute.xlu2 %1769 }
 0x2cd   :  { %v2263_v63 = vmul.f32 %v1770_v62, %v247_v59  ;;  %v1720_v0 = vpop.permute.xlu1 %1719  ;;  %v1715_v1 = vpop.permute.xlu0 %1714 }
 0x2ce   :  { %v2253_v2 = vmul.f32 %v1720_v0, %v237_v60  ;;  %v2252_v3 = vmul.f32 %v1715_v1, %v236_v61  ;;  %v586_v0 = vld [vmem:[%s5508_s1 + $0x8f8] sm:$0xff]  ;;  %v585_v1 = vld [vmem:[%s5508_s1 + $0x8f0] sm:$0xff] }
 0x2cf   :  { %2552 = vst.msk [vmem:[%s5510_s2 + $0x760] sm:$0xff] %vm2315_vm0, %v2263_v63 }
 0x2d0   :  { %2542 = vst.msk [vmem:[%s5510_s2 + $0x710] sm:$0xff] %vm2315_vm0, %v2253_v2  ;;  %v584_v2 = vld [vmem:[%s5508_s1 + $0x8e8] sm:$0xff] }
 0x2d1   :  { %2541 = vst.msk [vmem:[%s5510_s2 + $0x708] sm:$0xff] %vm2315_vm0, %v2252_v3  ;;  %v265_v3 = vld [vmem:[%s5509_s0 + $0x7f0] sm:$0xff] }
 0x2d2   :  { %1949 = vperm.xlu2 %2611, %v571_v4   ;;  %v255_v4 = vld [vmem:[%s5509_s0 + $0x7a0] sm:$0xff] }
 0x2d3   :  { %1944 = vperm.xlu1 %2610, %v570_v5   ;;  %1939 = vperm.xlu0 %2609, %v569_v6   ;;  %v254_v5 = vld [vmem:[%s5509_s0 + $0x798] sm:$0xff] }
 0x2d4   :  { %v1785_v10 = vpop.permute.xlu2 %1784 }
 0x2d5   :  { %v2266_v11 = vmul.f32 %v1785_v10, %v250_v7  ;;  %v1735_v12 = vpop.permute.xlu1 %1734  ;;  %v1730_v13 = vpop.permute.xlu0 %1729 }
 0x2d6   :  { %v2256_v14 = vmul.f32 %v1735_v12, %v240_v8  ;;  %v2255_v15 = vmul.f32 %v1730_v13, %v239_v9  ;;  %v268_v12 = vld [vmem:[%s5509_s0 + $0x808] sm:$0xff]  ;;  %v258_v13 = vld [vmem:[%s5509_s0 + $0x7b8] sm:$0xff] }
 0x2d7   :  { %2555 = vst.msk [vmem:[%s5510_s2 + $0x778] sm:$0xff] %vm2315_vm0, %v2266_v11 }
 0x2d8   :  { %2545 = vst.msk [vmem:[%s5510_s2 + $0x728] sm:$0xff] %vm2315_vm0, %v2256_v14  ;;  %v257_v14 = vld [vmem:[%s5509_s0 + $0x7b0] sm:$0xff] }
 0x2d9   :  { %2544 = vst.msk [vmem:[%s5510_s2 + $0x720] sm:$0xff] %vm2315_vm0, %v2255_v15 }
 0x2da   :  { %1964 = vperm.xlu2 %2611, %v574_v16  }
 0x2db   :  { %1959 = vperm.xlu1 %2610, %v573_v17   ;;  %1954 = vperm.xlu0 %2609, %v572_v18  }
 0x2dc   :  { %v1800_v22 = vpop.permute.xlu2 %1799 }
 0x2dd   :  { %v2269_v23 = vmul.f32 %v1800_v22, %v253_v19  ;;  %v1750_v24 = vpop.permute.xlu1 %1749  ;;  %v1745_v25 = vpop.permute.xlu0 %1744  ;;  %v261_v22 = vld [vmem:[%s5509_s0 + $0x7d0] sm:$0xff] }
 0x2de   :  { %v2259_v26 = vmul.f32 %v1750_v24, %v243_v20  ;;  %v2258_v27 = vmul.f32 %v1745_v25, %v242_v21  ;;  %v271_v21 = vld [vmem:[%s5509_s0 + $0x820] sm:$0xff] }
 0x2df   :  { %2558 = vst.msk [vmem:[%s5510_s2 + $0x790] sm:$0xff] %vm2315_vm0, %v2269_v23  ;;  %v260_v23 = vld [vmem:[%s5509_s0 + $0x7c8] sm:$0xff] }
 0x2e0   :  { %2548 = vst.msk [vmem:[%s5510_s2 + $0x740] sm:$0xff] %vm2315_vm0, %v2259_v26 }
 0x2e1   :  { %2547 = vst.msk [vmem:[%s5510_s2 + $0x738] sm:$0xff] %vm2315_vm0, %v2258_v27 }
 0x2e2   :  { %1979 = vperm.xlu2 %2611, %v577_v28  }
 0x2e3   :  { %1974 = vperm.xlu1 %2610, %v576_v29   ;;  %1969 = vperm.xlu0 %2609, %v575_v30   ;;  %v274_v30 = vld [vmem:[%s5509_s0 + $0x838] sm:$0xff] }
 0x2e4   :  { %v1815_v34 = vpop.permute.xlu2 %1814 }
 0x2e5   :  { %v2272_v35 = vmul.f32 %v1815_v34, %v256_v31  ;;  %v1765_v36 = vpop.permute.xlu1 %1764  ;;  %v1760_v37 = vpop.permute.xlu0 %1759  ;;  %v264_v31 = vld [vmem:[%s5509_s0 + $0x7e8] sm:$0xff] }
 0x2e6   :  { %v2262_v38 = vmul.f32 %v1765_v36, %v246_v32  ;;  %v2261_v39 = vmul.f32 %v1760_v37, %v245_v33  ;;  %v263_v32 = vld [vmem:[%s5509_s0 + $0x7e0] sm:$0xff] }
 0x2e7   :  { %2561 = vst.msk [vmem:[%s5510_s2 + $0x7a8] sm:$0xff] %vm2315_vm0, %v2272_v35 }
 0x2e8   :  { %2551 = vst.msk [vmem:[%s5510_s2 + $0x758] sm:$0xff] %vm2315_vm0, %v2262_v38 }
 0x2e9   :  { %2550 = vst.msk [vmem:[%s5510_s2 + $0x750] sm:$0xff] %vm2315_vm0, %v2261_v39  ;;  %v277_v39 = vld [vmem:[%s5509_s0 + $0x850] sm:$0xff] }
 0x2ea   :  { %1994 = vperm.xlu2 %2611, %v580_v40   ;;  %v267_v40 = vld [vmem:[%s5509_s0 + $0x800] sm:$0xff] }
 0x2eb   :  { %1989 = vperm.xlu1 %2610, %v579_v41   ;;  %1984 = vperm.xlu0 %2609, %v578_v42   ;;  %v266_v41 = vld [vmem:[%s5509_s0 + $0x7f8] sm:$0xff] }
 0x2ec   :  { %v1830_v46 = vpop.permute.xlu2 %1829 }
 0x2ed   :  { %v2275_v47 = vmul.f32 %v1830_v46, %v259_v43  ;;  %v1780_v48 = vpop.permute.xlu1 %1779  ;;  %v1775_v49 = vpop.permute.xlu0 %1774 }
 0x2ee   :  { %v2265_v50 = vmul.f32 %v1780_v48, %v249_v44  ;;  %v2264_v51 = vmul.f32 %v1775_v49, %v248_v45  ;;  %v280_v48 = vld [vmem:[%s5509_s0 + $0x868] sm:$0xff]  ;;  %v270_v49 = vld [vmem:[%s5509_s0 + $0x818] sm:$0xff] }
 0x2ef   :  { %2564 = vst.msk [vmem:[%s5510_s2 + $0x7c0] sm:$0xff] %vm2315_vm0, %v2275_v47 }
 0x2f0   :  { %2554 = vst.msk [vmem:[%s5510_s2 + $0x770] sm:$0xff] %vm2315_vm0, %v2265_v50  ;;  %v269_v50 = vld [vmem:[%s5509_s0 + $0x810] sm:$0xff] }
 0x2f1   :  { %2553 = vst.msk [vmem:[%s5510_s2 + $0x768] sm:$0xff] %vm2315_vm0, %v2264_v51 }
 0x2f2   :  { %2009 = vperm.xlu2 %2611, %v583_v52  }
 0x2f3   :  { %2004 = vperm.xlu1 %2610, %v582_v53   ;;  %1999 = vperm.xlu0 %2609, %v581_v54  }
 0x2f4   :  { %v1845_v58 = vpop.permute.xlu2 %1844 }
 0x2f5   :  { %v2278_v59 = vmul.f32 %v1845_v58, %v262_v55  ;;  %v1795_v60 = vpop.permute.xlu1 %1794  ;;  %v1790_v61 = vpop.permute.xlu0 %1789  ;;  %v273_v58 = vld [vmem:[%s5509_s0 + $0x830] sm:$0xff] }
 0x2f6   :  { %v2268_v62 = vmul.f32 %v1795_v60, %v252_v56  ;;  %v2267_v63 = vmul.f32 %v1790_v61, %v251_v57  ;;  %v283_v57 = vld [vmem:[%s5509_s0 + $0x880] sm:$0xff] }
 0x2f7   :  { %2567 = vst.msk [vmem:[%s5510_s2 + $0x7d8] sm:$0xff] %vm2315_vm0, %v2278_v59  ;;  %v272_v59 = vld [vmem:[%s5509_s0 + $0x828] sm:$0xff] }
 0x2f8   :  { %2557 = vst.msk [vmem:[%s5510_s2 + $0x788] sm:$0xff] %vm2315_vm0, %v2268_v62 }
 0x2f9   :  { %2556 = vst.msk [vmem:[%s5510_s2 + $0x780] sm:$0xff] %vm2315_vm0, %v2267_v63 }
 0x2fa   :  { %2024 = vperm.xlu2 %2611, %v586_v0  }
 0x2fb   :  { %2019 = vperm.xlu1 %2610, %v585_v1   ;;  %2014 = vperm.xlu0 %2609, %v584_v2   ;;  %v286_v2 = vld [vmem:[%s5509_s0 + $0x898] sm:$0xff] }
 0x2fc   :  { %v1860_v6 = vpop.permute.xlu2 %1859 }
 0x2fd   :  { %v2281_v7 = vmul.f32 %v1860_v6, %v265_v3  ;;  %v1810_v8 = vpop.permute.xlu1 %1809  ;;  %v1805_v9 = vpop.permute.xlu0 %1804  ;;  %v276_v3 = vld [vmem:[%s5509_s0 + $0x848] sm:$0xff] }
 0x2fe   :  { %v2271_v10 = vmul.f32 %v1810_v8, %v255_v4  ;;  %v2270_v11 = vmul.f32 %v1805_v9, %v254_v5  ;;  %v275_v4 = vld [vmem:[%s5509_s0 + $0x840] sm:$0xff] }
 0x2ff   :  { %2570 = vst.msk [vmem:[%s5510_s2 + $0x7f0] sm:$0xff] %vm2315_vm0, %v2281_v7 }
 0x300   :  { %2560 = vst.msk [vmem:[%s5510_s2 + $0x7a0] sm:$0xff] %vm2315_vm0, %v2271_v10 }
 0x301   :  { %2559 = vst.msk [vmem:[%s5510_s2 + $0x798] sm:$0xff] %vm2315_vm0, %v2270_v11  ;;  %v289_v11 = vld [vmem:[%s5509_s0 + $0x8b0] sm:$0xff] }
 0x304   :  { %v1875_v15 = vpop.permute.xlu2 %1874 }
 0x305   :  { %v2284_v16 = vmul.f32 %v1875_v15, %v268_v12  ;;  %v1825_v17 = vpop.permute.xlu1 %1824  ;;  %v1820_v18 = vpop.permute.xlu0 %1819  ;;  %v279_v12 = vld [vmem:[%s5509_s0 + $0x860] sm:$0xff] }
 0x306   :  { %v2274_v19 = vmul.f32 %v1825_v17, %v258_v13  ;;  %v2273_v20 = vmul.f32 %v1820_v18, %v257_v14  ;;  %v278_v13 = vld [vmem:[%s5509_s0 + $0x858] sm:$0xff] }
 0x307   :  { %2573 = vst.msk [vmem:[%s5510_s2 + $0x808] sm:$0xff] %vm2315_vm0, %v2284_v16 }
 0x308   :  { %2563 = vst.msk [vmem:[%s5510_s2 + $0x7b8] sm:$0xff] %vm2315_vm0, %v2274_v19 }
 0x309   :  { %2562 = vst.msk [vmem:[%s5510_s2 + $0x7b0] sm:$0xff] %vm2315_vm0, %v2273_v20  ;;  %v292_v20 = vld [vmem:[%s5509_s0 + $0x8c8] sm:$0xff] }
 0x30c   :  { %v1890_v24 = vpop.permute.xlu2 %1889 }
 0x30d   :  { %v2287_v25 = vmul.f32 %v1890_v24, %v271_v21  ;;  %v1840_v26 = vpop.permute.xlu1 %1839  ;;  %v1835_v27 = vpop.permute.xlu0 %1834  ;;  %v282_v21 = vld [vmem:[%s5509_s0 + $0x878] sm:$0xff] }
 0x30e   :  { %v2277_v28 = vmul.f32 %v1840_v26, %v261_v22  ;;  %v2276_v29 = vmul.f32 %v1835_v27, %v260_v23  ;;  %v281_v22 = vld [vmem:[%s5509_s0 + $0x870] sm:$0xff] }
 0x30f   :  { %2576 = vst.msk [vmem:[%s5510_s2 + $0x820] sm:$0xff] %vm2315_vm0, %v2287_v25 }
 0x310   :  { %2566 = vst.msk [vmem:[%s5510_s2 + $0x7d0] sm:$0xff] %vm2315_vm0, %v2277_v28 }
 0x311   :  { %2565 = vst.msk [vmem:[%s5510_s2 + $0x7c8] sm:$0xff] %vm2315_vm0, %v2276_v29  ;;  %v295_v29 = vld [vmem:[%s5509_s0 + $0x8e0] sm:$0xff] }
 0x314   :  { %v1905_v33 = vpop.permute.xlu2 %1904 }
 0x315   :  { %v2290_v34 = vmul.f32 %v1905_v33, %v274_v30  ;;  %v1855_v35 = vpop.permute.xlu1 %1854  ;;  %v1850_v36 = vpop.permute.xlu0 %1849  ;;  %v285_v30 = vld [vmem:[%s5509_s0 + $0x890] sm:$0xff] }
 0x316   :  { %v2280_v37 = vmul.f32 %v1855_v35, %v264_v31  ;;  %v2279_v38 = vmul.f32 %v1850_v36, %v263_v32  ;;  %v284_v31 = vld [vmem:[%s5509_s0 + $0x888] sm:$0xff] }
 0x317   :  { %2579 = vst.msk [vmem:[%s5510_s2 + $0x838] sm:$0xff] %vm2315_vm0, %v2290_v34 }
 0x318   :  { %2569 = vst.msk [vmem:[%s5510_s2 + $0x7e8] sm:$0xff] %vm2315_vm0, %v2280_v37 }
 0x319   :  { %2568 = vst.msk [vmem:[%s5510_s2 + $0x7e0] sm:$0xff] %vm2315_vm0, %v2279_v38  ;;  %v298_v38 = vld [vmem:[%s5509_s0 + $0x8f8] sm:$0xff] }
 0x31c   :  { %v1920_v42 = vpop.permute.xlu2 %1919 }
 0x31d   :  { %v2293_v43 = vmul.f32 %v1920_v42, %v277_v39  ;;  %v1870_v44 = vpop.permute.xlu1 %1869  ;;  %v1865_v45 = vpop.permute.xlu0 %1864  ;;  %v288_v39 = vld [vmem:[%s5509_s0 + $0x8a8] sm:$0xff] }
 0x31e   :  { %v2283_v46 = vmul.f32 %v1870_v44, %v267_v40  ;;  %v2282_v47 = vmul.f32 %v1865_v45, %v266_v41  ;;  %v287_v40 = vld [vmem:[%s5509_s0 + $0x8a0] sm:$0xff] }
 0x31f   :  { %2582 = vst.msk [vmem:[%s5510_s2 + $0x850] sm:$0xff] %vm2315_vm0, %v2293_v43 }
 0x320   :  { %2572 = vst.msk [vmem:[%s5510_s2 + $0x800] sm:$0xff] %vm2315_vm0, %v2283_v46 }
 0x321   :  { %2571 = vst.msk [vmem:[%s5510_s2 + $0x7f8] sm:$0xff] %vm2315_vm0, %v2282_v47  ;;  %v291_v47 = vld [vmem:[%s5509_s0 + $0x8c0] sm:$0xff] }
 0x324   :  { %v1935_v51 = vpop.permute.xlu2 %1934 }
 0x325   :  { %v2296_v52 = vmul.f32 %v1935_v51, %v280_v48  ;;  %v1885_v53 = vpop.permute.xlu1 %1884  ;;  %v1880_v54 = vpop.permute.xlu0 %1879  ;;  %v290_v48 = vld [vmem:[%s5509_s0 + $0x8b8] sm:$0xff] }
 0x326   :  { %v2286_v55 = vmul.f32 %v1885_v53, %v270_v49  ;;  %v2285_v56 = vmul.f32 %v1880_v54, %v269_v50  ;;  %v294_v53 = vld [vmem:[%s5509_s0 + $0x8d8] sm:$0xff]  ;;  %v293_v54 = vld [vmem:[%s5509_s0 + $0x8d0] sm:$0xff] }
 0x327   :  { %2585 = vst.msk [vmem:[%s5510_s2 + $0x868] sm:$0xff] %vm2315_vm0, %v2296_v52 }
 0x328   :  { %2575 = vst.msk [vmem:[%s5510_s2 + $0x818] sm:$0xff] %vm2315_vm0, %v2286_v55 }
 0x329   :  { %2574 = vst.msk [vmem:[%s5510_s2 + $0x810] sm:$0xff] %vm2315_vm0, %v2285_v56 }
 0x32c   :  { %v1950_v60 = vpop.permute.xlu2 %1949 }
 0x32d   :  { %v2299_v61 = vmul.f32 %v1950_v60, %v283_v57  ;;  %v1900_v62 = vpop.permute.xlu1 %1899  ;;  %v1895_v63 = vpop.permute.xlu0 %1894  ;;  %v296_v60 = vld [vmem:[%s5509_s0 + $0x8e8] sm:$0xff] }
 0x32e   :  { %v2289_v0 = vmul.f32 %v1900_v62, %v273_v58  ;;  %v2288_v1 = vmul.f32 %v1895_v63, %v272_v59  ;;  %v297_v59 = vld [vmem:[%s5509_s0 + $0x8f0] sm:$0xff] }
 0x32f   :  { %2588 = vst.msk [vmem:[%s5510_s2 + $0x880] sm:$0xff] %vm2315_vm0, %v2299_v61 }
 0x330   :  { %2578 = vst.msk [vmem:[%s5510_s2 + $0x830] sm:$0xff] %vm2315_vm0, %v2289_v0 }
 0x331   :  { %2577 = vst.msk [vmem:[%s5510_s2 + $0x828] sm:$0xff] %vm2315_vm0, %v2288_v1 }
 0x334   :  { %v1965_v5 = vpop.permute.xlu2 %1964 }
 0x335   :  { %v2302_v6 = vmul.f32 %v1965_v5, %v286_v2  ;;  %v1915_v7 = vpop.permute.xlu1 %1914  ;;  %v1910_v8 = vpop.permute.xlu0 %1909 }
 0x336   :  { %v2292_v9 = vmul.f32 %v1915_v7, %v276_v3  ;;  %v2291_v10 = vmul.f32 %v1910_v8, %v275_v4 }
 0x337   :  { %2591 = vst.msk [vmem:[%s5510_s2 + $0x898] sm:$0xff] %vm2315_vm0, %v2302_v6 }
 0x338   :  { %2581 = vst.msk [vmem:[%s5510_s2 + $0x848] sm:$0xff] %vm2315_vm0, %v2292_v9 }
 0x339   :  { %2580 = vst.msk [vmem:[%s5510_s2 + $0x840] sm:$0xff] %vm2315_vm0, %v2291_v10 }
 0x33c   :  { %v1980_v14 = vpop.permute.xlu2 %1979 }
 0x33d   :  { %v2305_v15 = vmul.f32 %v1980_v14, %v289_v11  ;;  %v1930_v16 = vpop.permute.xlu1 %1929  ;;  %v1925_v17 = vpop.permute.xlu0 %1924 }
 0x33e   :  { %v2295_v18 = vmul.f32 %v1930_v16, %v279_v12  ;;  %v2294_v19 = vmul.f32 %v1925_v17, %v278_v13 }
 0x33f   :  { %2594 = vst.msk [vmem:[%s5510_s2 + $0x8b0] sm:$0xff] %vm2315_vm0, %v2305_v15 }
 0x340   :  { %2584 = vst.msk [vmem:[%s5510_s2 + $0x860] sm:$0xff] %vm2315_vm0, %v2295_v18 }
 0x341   :  { %2583 = vst.msk [vmem:[%s5510_s2 + $0x858] sm:$0xff] %vm2315_vm0, %v2294_v19 }
 0x344   :  { %v1995_v23 = vpop.permute.xlu2 %1994 }
 0x345   :  { %v2308_v24 = vmul.f32 %v1995_v23, %v292_v20  ;;  %v1945_v25 = vpop.permute.xlu1 %1944  ;;  %v1940_v26 = vpop.permute.xlu0 %1939 }
 0x346   :  { %v2298_v27 = vmul.f32 %v1945_v25, %v282_v21  ;;  %v2297_v28 = vmul.f32 %v1940_v26, %v281_v22 }
 0x347   :  { %2597 = vst.msk [vmem:[%s5510_s2 + $0x8c8] sm:$0xff] %vm2315_vm0, %v2308_v24 }
 0x348   :  { %2587 = vst.msk [vmem:[%s5510_s2 + $0x878] sm:$0xff] %vm2315_vm0, %v2298_v27 }
 0x349   :  { %2586 = vst.msk [vmem:[%s5510_s2 + $0x870] sm:$0xff] %vm2315_vm0, %v2297_v28 }
 0x34c   :  { %v2010_v32 = vpop.permute.xlu2 %2009 }
 0x34d   :  { %v2311_v33 = vmul.f32 %v2010_v32, %v295_v29  ;;  %v1960_v34 = vpop.permute.xlu1 %1959  ;;  %v1955_v35 = vpop.permute.xlu0 %1954 }
 0x34e   :  { %v2301_v36 = vmul.f32 %v1960_v34, %v285_v30  ;;  %v2300_v37 = vmul.f32 %v1955_v35, %v284_v31 }
 0x34f   :  { %2600 = vst.msk [vmem:[%s5510_s2 + $0x8e0] sm:$0xff] %vm2315_vm0, %v2311_v33 }
 0x350   :  { %2590 = vst.msk [vmem:[%s5510_s2 + $0x890] sm:$0xff] %vm2315_vm0, %v2301_v36 }
 0x351   :  { %2589 = vst.msk [vmem:[%s5510_s2 + $0x888] sm:$0xff] %vm2315_vm0, %v2300_v37 }
 0x354   :  { %v2025_v41 = vpop.permute.xlu2 %2024 }
 0x355   :  { %v2314_v42 = vmul.f32 %v2025_v41, %v298_v38  ;;  %v1975_v43 = vpop.permute.xlu1 %1974  ;;  %v1970_v44 = vpop.permute.xlu0 %1969 }
 0x356   :  { %v2304_v45 = vmul.f32 %v1975_v43, %v288_v39  ;;  %v2303_v46 = vmul.f32 %v1970_v44, %v287_v40 }
 0x357   :  { %2603 = vst.msk [vmem:[%s5510_s2 + $0x8f8] sm:$0xff] %vm2315_vm0, %v2314_v42 }
 0x358   :  { %2593 = vst.msk [vmem:[%s5510_s2 + $0x8a8] sm:$0xff] %vm2315_vm0, %v2304_v45 }
 0x359   :  { %2592 = vst.msk [vmem:[%s5510_s2 + $0x8a0] sm:$0xff] %vm2315_vm0, %v2303_v46 }
 0x35d   :  { %v1990_v49 = vpop.permute.xlu1 %1989  ;;  %v1985_v50 = vpop.permute.xlu0 %1984 }
 0x35e   :  { %v2307_v51 = vmul.f32 %v1990_v49, %v291_v47  ;;  %v2306_v52 = vmul.f32 %v1985_v50, %v290_v48 }
 0x360   :  { %2596 = vst.msk [vmem:[%s5510_s2 + $0x8c0] sm:$0xff] %vm2315_vm0, %v2307_v51 }
 0x361   :  { %2595 = vst.msk [vmem:[%s5510_s2 + $0x8b8] sm:$0xff] %vm2315_vm0, %v2306_v52 }
 0x365   :  { %v2005_v55 = vpop.permute.xlu1 %2004  ;;  %v2000_v56 = vpop.permute.xlu0 %1999 }
 0x366   :  { %v2310_v57 = vmul.f32 %v2005_v55, %v294_v53  ;;  %v2309_v58 = vmul.f32 %v2000_v56, %v293_v54 }
 0x368   :  { %2599 = vst.msk [vmem:[%s5510_s2 + $0x8d8] sm:$0xff] %vm2315_vm0, %v2310_v57 }
 0x369   :  { %2598 = vst.msk [vmem:[%s5510_s2 + $0x8d0] sm:$0xff] %vm2315_vm0, %v2309_v58 }
 0x36d   :  { %v2020_v61 = vpop.permute.xlu1 %2019  ;;  %v2015_v62 = vpop.permute.xlu0 %2014 }
 0x36e   :  { %v2313_v63 = vmul.f32 %v2020_v61, %v297_v59  ;;  %v2312_v0 = vmul.f32 %v2015_v62, %v296_v60 }
 0x370   :  { %2602 = vst.msk [vmem:[%s5510_s2 + $0x8f0] sm:$0xff] %vm2315_vm0, %v2313_v63 }
 0x371   :  { %2601 = vst.msk [vmem:[%s5510_s2 + $0x8e8] sm:$0xff] %vm2315_vm0, %v2312_v0 }

</bundles_post_ra>
